<compile_context>
chip_gen: v5e
topology: v5e:2x2
jax: 0.10.0
libtpu: 0.0.40
codegen_flags: <defaults>
</compile_context>

<pallas_src>
import functools

import jax
import jax.numpy as jnp
from jax.experimental import pallas as pl
from jax.experimental.pallas import tpu as pltpu

F32 = jnp.float32
LANE = 128
IMG_ROWS, IMG_COLS = 10, 10          # ImagePatchNAM(num_patches=100): factorize(100) = (10, 10)
NUM_PATCHES = IMG_ROWS * IMG_COLS

VMEM_SPEC = pl.BlockSpec(memory_space=pltpu.MemorySpace.VMEM)
SMEM_SPEC = pl.BlockSpec(memory_space=pltpu.MemorySpace.SMEM)


# ------------------------------ fused kernel -------------------------------

def _ufm3_kernel(ids_ref, emb_ref, attnw_ref, patches_ref, tab_ref, nam_ref,
                 head_ref, out_ref, *, seq_len, tab_dim, hidden):
    B = out_ref.shape[0]
    V, D = emb_ref.shape
    S = seq_len
    Hn = hidden
    NP = NUM_PATCHES

    # --- token embedding gather: ONE one-hot MXU push for all B*S rows ------
    ids = ids_ref[...]                                                  # (B*S, 1) int32
    BS = ids.shape[0]
    oh = (jax.lax.broadcasted_iota(jnp.int32, (BS, V), 1) == ids).astype(F32)
    emb_flat = jnp.dot(oh, emb_ref[...], preferred_element_type=F32)    # (B*S, D)
    emb3 = emb_flat.reshape(B, S, D)
    text_feat = emb3[:, 0, :]                                           # (B, D) sublane select

    # --- InterpretableAttention: row 0 of softmax(q @ k^T, -1) --------------
    wq_t = attnw_ref[0:D, :]
    wk_t = attnw_ref[D:2 * D, :]
    bq = attnw_ref[2 * D:2 * D + 1, :]
    bk = attnw_ref[2 * D + 8:2 * D + 9, :]
    wt = attnw_ref[2 * D + 16:2 * D + 17, :]
    q0 = jnp.dot(text_feat, wq_t, preferred_element_type=F32) + bq      # (B, D)
    k = (jnp.dot(emb_flat, wk_t, preferred_element_type=F32) + bk).reshape(B, S, D)
    scores = jnp.sum(q0[:, None, :] * k, axis=-1)                       # (B, S)
    attn = jax.nn.softmax(scores, axis=-1)

    # --- fused image+tabular NAM over ONE 128-lane feature slab -------------
    #     feature lanes: [0,100) patch means, [100,100+T) tabular, rest zero
    feats = jnp.mean(patches_ref[...], axis=1) + tab_ref[...]           # (B, 128)
    w1 = nam_ref[0:Hn, :]
    b1 = nam_ref[Hn:2 * Hn, :]
    w2 = nam_ref[2 * Hn:3 * Hn, :]
    b2 = nam_ref[3 * Hn:3 * Hn + 1, :]
    h = jnp.maximum(feats[:, None, :] * w1[None, :, :] + b1[None, :, :], 0.0)  # (B, H, 128)
    contrib = jnp.sum(h * w2[None, :, :], axis=1) + b2                  # (B, 128) sublane reduce
    lane = jax.lax.broadcasted_iota(jnp.int32, (B, LANE), 1)
    img_score = jnp.sum(jnp.where(lane < NP, contrib, 0.0), axis=-1, keepdims=True)
    tab_score = jnp.sum(jnp.where((lane >= NP) & (lane < NP + tab_dim), contrib, 0.0),
                        axis=-1, keepdims=True)

    # --- NAFRHead: unrolled 3x3 fusion, scalar weights from SMEM ------------
    bt, wo, bo = head_ref[0], head_ref[1], head_ref[2]
    text_score = jnp.sum(text_feat * wt, axis=-1, keepdims=True) + bt   # (B, 1)
    s = (tab_score, text_score, img_score)
    logits = [s[0] * head_ref[6 + 3 * j + 0]
              + s[1] * head_ref[6 + 3 * j + 1]
              + s[2] * head_ref[6 + 3 * j + 2]
              + head_ref[3 + j]
              for j in range(3)]
    m = jnp.maximum(jnp.maximum(logits[0], logits[1]), logits[2])
    e = [jnp.exp(lg - m) for lg in logits]
    denom = e[0] + e[1] + e[2]
    w = [ei / denom for ei in e]                                        # softmax over 3 columns
    fused = s[0] * w[0] + s[1] * w[1] + s[2] * w[2]
    out = fused * wo + bo                                               # (B, 1)

    # --- lane-aligned packed output ------------------------------------------
    # [ out@0 | fusion_w@8..10 | attn@16..16+S | pad | contribs(img|tab)@128..255 ]
    out_ref[:, 0:LANE] = jnp.zeros((B, LANE), F32)
    out_ref[:, 0:1] = out
    out_ref[:, 8:9] = w[0]
    out_ref[:, 9:10] = w[1]
    out_ref[:, 10:11] = w[2]
    out_ref[:, 16:16 + S] = attn
    out_ref[:, LANE:2 * LANE] = contrib                                 # one unmasked 128-lane store


# ------------------------------- glue (JAX) ---------------------------------

def image_to_patches(img):
    # (B, C, H, W) -> (B, C*ph*pw, NUM_PATCHES): patch index (row-major) on LANES.
    B, C, H, W = img.shape
    ph, pw = H // IMG_ROWS, W // IMG_COLS
    p = img.reshape(B, C, IMG_ROWS, ph, IMG_COLS, pw)
    p = jnp.transpose(p, (0, 1, 3, 5, 2, 4))          # (B, C, ph, pw, rows, cols)
    return p.reshape(B, C * ph * pw, NUM_PATCHES)


def prepare_params(p):
    """One-time repack of PyTorch-layout params into 3 VMEM slabs + 1 SMEM vector."""
    D = p["wq"].shape[0]
    H = p["img_w1"].shape[1]
    T = p["tab_w1"].shape[0]
    assert NUM_PATCHES + T <= LANE

    # attention / text-proj slab: sublane-stacked, all row offsets 8-aligned.
    attnw = jnp.zeros((2 * D + 24, D), F32)
    attnw = attnw.at[0:D].set(p["wq"].T)
    attnw = attnw.at[D:2 * D].set(p["wk"].T)
    attnw = attnw.at[2 * D].set(p["bq"][0])
    attnw = attnw.at[2 * D + 8].set(p["bk"][0])
    attnw = attnw.at[2 * D + 16].set(p["wt"][0])

    # fused NAM slab: rows [0,H) w1^T / [H,2H) b1^T / [2H,3H) w2^T / row 3H b2;
    # lanes [0,100) image feature nets, [100,100+T) tabular feature nets, rest zero.
    nam = jnp.zeros((3 * H + 8, LANE), F32)
    nam = nam.at[0:H, 0:NUM_PATCHES].set(p["img_w1"].T)
    nam = nam.at[H:2 * H, 0:NUM_PATCHES].set(p["img_b1"].T)
    nam = nam.at[2 * H:3 * H, 0:NUM_PATCHES].set(p["img_w2"].T)
    nam = nam.at[3 * H, 0:NUM_PATCHES].set(p["img_b2"][0])
    nam = nam.at[0:H, NUM_PATCHES:NUM_PATCHES + T].set(p["tab_w1"].T)
    nam = nam.at[H:2 * H, NUM_PATCHES:NUM_PATCHES + T].set(p["tab_b1"].T)
    nam = nam.at[2 * H:3 * H, NUM_PATCHES:NUM_PATCHES + T].set(p["tab_w2"].T)
    nam = nam.at[3 * H, NUM_PATCHES:NUM_PATCHES + T].set(p["tab_b2"][0])

    # head scalars -> SMEM vector: [bt, wo, bo, bf(3), wf row-major (9), pad]
    head = jnp.zeros((16,), F32)
    head = head.at[0].set(p["bt"][0, 0])
    head = head.at[1].set(p["wo"][0, 0])
    head = head.at[2].set(p["bo"][0, 0])
    head = head.at[3:6].set(p["bf"][0])
    head = head.at[6:15].set(p["wf"].reshape(-1))

    return {"emb": p["emb"].astype(F32), "attnw": attnw, "nam": nam, "head": head}


@jax.jit
def ufm3_forward(kp, tab, ids, img):
    B, S = ids.shape
    T = tab.shape[1]
    H = (kp["nam"].shape[0] - 8) // 3

    ids_flat = ids.reshape(B * S, 1).astype(jnp.int32)
    patches = image_to_patches(img)                                   # (B, C*ph*pw, 100)
    patches128 = jnp.pad(patches, ((0, 0), (0, 0), (0, LANE - NUM_PATCHES)))
    tab128 = jnp.pad(tab.astype(F32), ((0, 0), (NUM_PATCHES, LANE - NUM_PATCHES - T)))

    # explicit VMEM budget: everything is resident at once (gridless, single-shot)
    n_bytes = 4 * (ids_flat.size + kp["emb"].size + kp["attnw"].size +
                   patches128.size + tab128.size + kp["nam"].size + B * 2 * LANE)
    vmem_limit = int(max(8 << 20, 4 * n_bytes))                        # generous headroom

    kernel = functools.partial(_ufm3_kernel, seq_len=S, tab_dim=T, hidden=H)
    packed = pl.pallas_call(
        kernel,
        out_shape=jax.ShapeDtypeStruct((B, 2 * LANE), F32),
        in_specs=[VMEM_SPEC, VMEM_SPEC, VMEM_SPEC, VMEM_SPEC, VMEM_SPEC, VMEM_SPEC,
                  SMEM_SPEC],
        out_specs=VMEM_SPEC,
        compiler_params=pltpu.CompilerParams(vmem_limit_bytes=vmem_limit),
    )(ids_flat, kp["emb"], kp["attnw"], patches128, tab128, kp["nam"], kp["head"])

    out = packed[:, 0:1]
    fusion_w = packed[:, 8:11]
    attn = packed[:, 16:16 + S]
    img_contribs = packed[:, LANE:LANE + NUM_PATCHES]
    tab_contribs = packed[:, LANE + NUM_PATCHES:LANE + NUM_PATCHES + T]
    return out, tab_contribs, attn, fusion_w, img_contribs


# --------------------------- pure-JAX reference -----------------------------

def _nam_ref(x, w1, b1, w2, b2):
    # reference layout: w1/b1/w2 stacked as (D, H), b2 (1, D)
    h = jnp.maximum(x[:, :, None] * w1[None] + b1[None], 0.0)
    c = jnp.sum(h * w2[None], axis=-1) + b2
    return jnp.sum(c, axis=1, keepdims=True), c


def reference_forward(p, tab, ids, img):
    emb = p["emb"][ids]
    q0 = emb[:, 0, :] @ p["wq"].T + p["bq"]
    k = emb @ p["wk"].T + p["bk"]
    attn = jax.nn.softmax(jnp.einsum("bd,bsd->bs", q0, k), axis=-1)
    text_feat = emb[:, 0, :]
    pf = image_to_patches(img).mean(axis=1)
    img_score, img_contribs = _nam_ref(pf, p["img_w1"], p["img_b1"], p["img_w2"], p["img_b2"])
    tab_score, tab_contribs = _nam_ref(tab, p["tab_w1"], p["tab_b1"], p["tab_w2"], p["tab_b2"])
    text_score = text_feat @ p["wt"].T + p["bt"]
    scores = jnp.concatenate([tab_score, text_score, img_score], axis=1)
    w = jax.nn.softmax(scores @ p["wf"].T + p["bf"], axis=1)
    fused = jnp.sum(scores * w, axis=1, keepdims=True)
    out = fused * p["wo"] + p["bo"]
    return out, tab_contribs, attn, w, img_contribs


# ---------------------------------- main -------------------------------------

def init_params(key, vocab, dim, tab_dim, hidden):
    ks = iter(jax.random.split(key, 32))

    def nrm(shape, scale=0.1):
        return (scale * jax.random.normal(next(ks), shape)).astype(F32)

    return {
        # embedding table (stand-in for OPT embed_tokens; synthetic, deterministic)
        "emb": nrm((vocab, dim), 0.5),
        # InterpretableAttention
        "wq": nrm((dim, dim)), "bq": nrm((1, dim)),
        "wk": nrm((dim, dim)), "bk": nrm((1, dim)),
        # ImagePatchNAM -> NAM(100): stacked FeatureNet params (D, H)
        "img_w1": nrm((NUM_PATCHES, hidden)), "img_b1": nrm((NUM_PATCHES, hidden)),
        "img_w2": nrm((NUM_PATCHES, hidden)), "img_b2": nrm((1, NUM_PATCHES)),
        # NAFRHead.nam -> NAM(tab_dim)
        "tab_w1": nrm((tab_dim, hidden)), "tab_b1": nrm((tab_dim, hidden)),
        "tab_w2": nrm((tab_dim, hidden)), "tab_b2": nrm((1, tab_dim)),
        # NAFRHead.text_proj / fusion / out
        "wt": nrm((1, dim)), "bt": nrm((1, 1)),
        "wf": nrm((3, 3)), "bf": nrm((1, 3)),
        "wo": nrm((1, 1)), "bo": nrm((1, 1)),
    }


if __name__ == "__main__":
    # batch 8 = one full f32 sublane tile (review: rows 3..8 are free)
    B, S, DIM = 8, 8, 32
    TAB_DIM = 8
    C, H, W = 3, 20, 20          # H, W divisible by 10 (100 patches hardcoded in module)
    VOCAB, HIDDEN = 50, 32

    root = jax.random.PRNGKey(0)
    k_p, k_tab, k_ids, k_img = jax.random.split(root, 4)
    params = init_params(k_p, VOCAB, DIM, TAB_DIM, HIDDEN)
    kparams = prepare_params(params)     # one-time weight re-layout/packing for the kernel

    tab = jax.random.normal(k_tab, (B, TAB_DIM), dtype=F32)
    ids = jax.random.randint(k_ids, (B, S), 0, VOCAB, dtype=jnp.int32)
    img = jax.random.normal(k_img, (B, C, H, W), dtype=F32)

    outs = jax.block_until_ready(ufm3_forward(kparams, tab, ids, img))

    refs = reference_forward(params, tab, ids, img)
    names = ["out", "tab_contribs", "attn_weights", "fusion_weights", "img_contribs"]
    for name, o, r in zip(names, outs, refs):
        assert o.shape == r.shape, (name, o.shape, r.shape)
        assert jnp.allclose(o, r, atol=1e-3, rtol=1e-3), name

    print("KERNEL_OK")
</pallas_src>

<mosaic_0001>
module attributes {stable_mosaic.version = 11 : i64} {
  func.func @_ufm3_kernel(%arg0: memref<64x1xi32, #tpu.memory_space<vmem>>, %arg1: memref<50x32xf32, #tpu.memory_space<vmem>>, %arg2: memref<88x32xf32, #tpu.memory_space<vmem>>, %arg3: memref<8x12x128xf32, #tpu.memory_space<vmem>>, %arg4: memref<8x128xf32, #tpu.memory_space<vmem>>, %arg5: memref<104x128xf32, #tpu.memory_space<vmem>>, %arg6: memref<16xf32, #tpu.memory_space<smem>>, %arg7: memref<8x256xf32, #tpu.memory_space<vmem>>) attributes {dimension_semantics = [], scalar_prefetch = 0 : i64, scratch_operands = 0 : i64, tpu.core_type = #tpu.core_type<tc>} {
    %c0 = arith.constant 0 : index
    %c0_0 = arith.constant 0 : index
    %0 = vector.load %arg0[%c0, %c0_0] : memref<64x1xi32, #tpu.memory_space<vmem>>, vector<64x1xi32>
    %1 = tpu.iota {dimensions = array<i32: 1>} : vector<64x50xi32>
    %2 = vector.broadcast %0 : vector<64x1xi32> to vector<64x50xi32>
    %3 = arith.cmpi eq, %1, %2 : vector<64x50xi32>
    %4 = arith.extui %3 : vector<64x50xi1> to vector<64x50xi32>
    %5 = arith.sitofp %4 : vector<64x50xi32> to vector<64x50xf32>
    %c0_1 = arith.constant 0 : index
    %c0_2 = arith.constant 0 : index
    %6 = vector.load %arg1[%c0_1, %c0_2] : memref<50x32xf32, #tpu.memory_space<vmem>>, vector<50x32xf32>
    %cst = arith.constant dense<0.000000e+00> : vector<64x32xf32>
    %7 = tpu.matmul %5, %6, %cst {dimension_numbers = #tpu.dot_dimension_numbers<[1], [0], [0], [1], [0, 0, 1, 1], [], []>} : vector<64x50xf32>, vector<50x32xf32>, vector<64x32xf32> -> vector<64x32xf32>
    %8 = vector.shape_cast %7 : vector<64x32xf32> to vector<8x8x32xf32>
    %9 = vector.extract_strided_slice %8 {offsets = [0, 0, 0], sizes = [8, 1, 32], strides = [1, 1, 1]} : vector<8x8x32xf32> to vector<8x1x32xf32>
    %10 = vector.shape_cast %9 : vector<8x1x32xf32> to vector<8x32xf32>
    %c0_3 = arith.constant 0 : index
    %c0_4 = arith.constant 0 : index
    %11 = vector.load %arg2[%c0_3, %c0_4] : memref<88x32xf32, #tpu.memory_space<vmem>>, vector<32x32xf32>
    %c32 = arith.constant 32 : index
    %c0_5 = arith.constant 0 : index
    %12 = vector.load %arg2[%c32, %c0_5] : memref<88x32xf32, #tpu.memory_space<vmem>>, vector<32x32xf32>
    %c64 = arith.constant 64 : index
    %c0_6 = arith.constant 0 : index
    %13 = vector.load %arg2[%c64, %c0_6] : memref<88x32xf32, #tpu.memory_space<vmem>>, vector<1x32xf32>
    %c72 = arith.constant 72 : index
    %c0_7 = arith.constant 0 : index
    %14 = vector.load %arg2[%c72, %c0_7] : memref<88x32xf32, #tpu.memory_space<vmem>>, vector<1x32xf32>
    %c80 = arith.constant 80 : index
    %c0_8 = arith.constant 0 : index
    %15 = vector.load %arg2[%c80, %c0_8] : memref<88x32xf32, #tpu.memory_space<vmem>>, vector<1x32xf32>
    %cst_9 = arith.constant dense<0.000000e+00> : vector<8x32xf32>
    %16 = tpu.matmul %10, %11, %cst_9 {dimension_numbers = #tpu.dot_dimension_numbers<[1], [0], [0], [1], [0, 0, 1, 1], [], []>} : vector<8x32xf32>, vector<32x32xf32>, vector<8x32xf32> -> vector<8x32xf32>
    %17 = vector.broadcast %13 : vector<1x32xf32> to vector<8x32xf32>
    %18 = arith.addf %16, %17 : vector<8x32xf32>
    %cst_10 = arith.constant dense<0.000000e+00> : vector<64x32xf32>
    %19 = tpu.matmul %7, %12, %cst_10 {dimension_numbers = #tpu.dot_dimension_numbers<[1], [0], [0], [1], [0, 0, 1, 1], [], []>} : vector<64x32xf32>, vector<32x32xf32>, vector<64x32xf32> -> vector<64x32xf32>
    %20 = vector.broadcast %14 : vector<1x32xf32> to vector<64x32xf32>
    %21 = arith.addf %19, %20 : vector<64x32xf32>
    %22 = vector.shape_cast %21 : vector<64x32xf32> to vector<8x8x32xf32>
    %23 = vector.shape_cast %18 : vector<8x32xf32> to vector<8x1x32xf32>
    %24 = vector.broadcast %23 : vector<8x1x32xf32> to vector<8x8x32xf32>
    %25 = arith.mulf %24, %22 : vector<8x8x32xf32>
    %cst_11 = arith.constant dense<0.000000e+00> : vector<8x8xf32>
    %26 = vector.multi_reduction <add>, %25, %cst_11 [2] : vector<8x8x32xf32> to vector<8x8xf32>
    %cst_12 = arith.constant dense<0xFF800000> : vector<8xf32>
    %27 = vector.multi_reduction <maximumf>, %26, %cst_12 [1] : vector<8x8xf32> to vector<8xf32>
    %cst_13 = arith.constant 0xFF800000 : f32
    %28 = vector.broadcast %cst_13 : f32 to vector<8xf32>
    %29 = arith.maximumf %28, %27 : vector<8xf32>
    %30 = vector.shape_cast %29 : vector<8xf32> to vector<8x1xf32>
    %31 = vector.broadcast %30 : vector<8x1xf32> to vector<8x8xf32>
    %32 = arith.subf %26, %31 : vector<8x8xf32>
    %33 = math.exp %32 : vector<8x8xf32>
    %cst_14 = arith.constant dense<0.000000e+00> : vector<8xf32>
    %34 = vector.multi_reduction <add>, %33, %cst_14 [1] : vector<8x8xf32> to vector<8xf32>
    %35 = vector.shape_cast %34 : vector<8xf32> to vector<8x1xf32>
    %36 = vector.broadcast %35 : vector<8x1xf32> to vector<8x8xf32>
    %37 = arith.divf %33, %36 : vector<8x8xf32>
    %c0_15 = arith.constant 0 : index
    %c0_16 = arith.constant 0 : index
    %c0_17 = arith.constant 0 : index
    %38 = vector.load %arg3[%c0_15, %c0_16, %c0_17] : memref<8x12x128xf32, #tpu.memory_space<vmem>>, vector<8x12x128xf32>
    %cst_18 = arith.constant dense<0.000000e+00> : vector<8x128xf32>
    %39 = vector.multi_reduction <add>, %38, %cst_18 [1] : vector<8x12x128xf32> to vector<8x128xf32>
    %cst_19 = arith.constant 1.200000e+01 : f32
    %40 = vector.broadcast %cst_19 : f32 to vector<8x128xf32>
    %41 = arith.divf %39, %40 : vector<8x128xf32>
    %c0_20 = arith.constant 0 : index
    %c0_21 = arith.constant 0 : index
    %42 = vector.load %arg4[%c0_20, %c0_21] : memref<8x128xf32, #tpu.memory_space<vmem>>, vector<8x128xf32>
    %43 = arith.addf %41, %42 : vector<8x128xf32>
    %c0_22 = arith.constant 0 : index
    %c0_23 = arith.constant 0 : index
    %44 = vector.load %arg5[%c0_22, %c0_23] : memref<104x128xf32, #tpu.memory_space<vmem>>, vector<32x128xf32>
    %c32_24 = arith.constant 32 : index
    %c0_25 = arith.constant 0 : index
    %45 = vector.load %arg5[%c32_24, %c0_25] : memref<104x128xf32, #tpu.memory_space<vmem>>, vector<32x128xf32>
    %c64_26 = arith.constant 64 : index
    %c0_27 = arith.constant 0 : index
    %46 = vector.load %arg5[%c64_26, %c0_27] : memref<104x128xf32, #tpu.memory_space<vmem>>, vector<32x128xf32>
    %c96 = arith.constant 96 : index
    %c0_28 = arith.constant 0 : index
    %47 = vector.load %arg5[%c96, %c0_28] : memref<104x128xf32, #tpu.memory_space<vmem>>, vector<1x128xf32>
    %48 = vector.shape_cast %43 : vector<8x128xf32> to vector<8x1x128xf32>
    %49 = vector.shape_cast %44 : vector<32x128xf32> to vector<1x32x128xf32>
    %50 = vector.broadcast %48 : vector<8x1x128xf32> to vector<8x32x128xf32>
    %51 = vector.broadcast %49 : vector<1x32x128xf32> to vector<8x32x128xf32>
    %52 = arith.mulf %50, %51 : vector<8x32x128xf32>
    %53 = vector.shape_cast %45 : vector<32x128xf32> to vector<1x32x128xf32>
    %54 = vector.broadcast %53 : vector<1x32x128xf32> to vector<8x32x128xf32>
    %55 = arith.addf %52, %54 : vector<8x32x128xf32>
    %cst_29 = arith.constant 0.000000e+00 : f32
    %56 = vector.broadcast %cst_29 : f32 to vector<8x32x128xf32>
    %57 = arith.maximumf %55, %56 : vector<8x32x128xf32>
    %58 = vector.shape_cast %46 : vector<32x128xf32> to vector<1x32x128xf32>
    %59 = vector.broadcast %58 : vector<1x32x128xf32> to vector<8x32x128xf32>
    %60 = arith.mulf %57, %59 : vector<8x32x128xf32>
    %cst_30 = arith.constant dense<0.000000e+00> : vector<8x128xf32>
    %61 = vector.multi_reduction <add>, %60, %cst_30 [1] : vector<8x32x128xf32> to vector<8x128xf32>
    %62 = vector.broadcast %47 : vector<1x128xf32> to vector<8x128xf32>
    %63 = arith.addf %61, %62 : vector<8x128xf32>
    %64 = tpu.iota {dimensions = array<i32: 1>} : vector<8x128xi32>
    %c100_i32 = arith.constant 100 : i32
    %65 = vector.broadcast %c100_i32 : i32 to vector<8x128xi32>
    %66 = arith.cmpi slt, %64, %65 : vector<8x128xi32>
    %cst_31 = arith.constant 0.000000e+00 : f32
    %67 = vector.broadcast %cst_31 : f32 to vector<8x128xf32>
    %68 = arith.select %66, %63, %67 : vector<8x128xi1>, vector<8x128xf32>
    %cst_32 = arith.constant dense<0.000000e+00> : vector<8xf32>
    %69 = vector.multi_reduction <add>, %68, %cst_32 [1] : vector<8x128xf32> to vector<8xf32>
    %70 = vector.shape_cast %69 : vector<8xf32> to vector<8x1xf32>
    %c100_i32_33 = arith.constant 100 : i32
    %71 = vector.broadcast %c100_i32_33 : i32 to vector<8x128xi32>
    %72 = arith.cmpi sge, %64, %71 : vector<8x128xi32>
    %c108_i32 = arith.constant 108 : i32
    %73 = vector.broadcast %c108_i32 : i32 to vector<8x128xi32>
    %74 = arith.cmpi slt, %64, %73 : vector<8x128xi32>
    %75 = arith.andi %72, %74 : vector<8x128xi1>
    %cst_34 = arith.constant 0.000000e+00 : f32
    %76 = vector.broadcast %cst_34 : f32 to vector<8x128xf32>
    %77 = arith.select %75, %63, %76 : vector<8x128xi1>, vector<8x128xf32>
    %cst_35 = arith.constant dense<0.000000e+00> : vector<8xf32>
    %78 = vector.multi_reduction <add>, %77, %cst_35 [1] : vector<8x128xf32> to vector<8xf32>
    %79 = vector.shape_cast %78 : vector<8xf32> to vector<8x1xf32>
    %c0_36 = arith.constant 0 : index
    %80 = memref.load %arg6[%c0_36] : memref<16xf32, #tpu.memory_space<smem>>
    %c1 = arith.constant 1 : index
    %81 = memref.load %arg6[%c1] : memref<16xf32, #tpu.memory_space<smem>>
    %c2 = arith.constant 2 : index
    %82 = memref.load %arg6[%c2] : memref<16xf32, #tpu.memory_space<smem>>
    %83 = vector.broadcast %15 : vector<1x32xf32> to vector<8x32xf32>
    %84 = arith.mulf %10, %83 : vector<8x32xf32>
    %cst_37 = arith.constant dense<0.000000e+00> : vector<8xf32>
    %85 = vector.multi_reduction <add>, %84, %cst_37 [1] : vector<8x32xf32> to vector<8xf32>
    %86 = vector.shape_cast %85 : vector<8xf32> to vector<8x1xf32>
    %87 = vector.broadcast %80 : f32 to vector<8x1xf32>
    %88 = arith.addf %86, %87 : vector<8x1xf32>
    %c6 = arith.constant 6 : index
    %89 = memref.load %arg6[%c6] : memref<16xf32, #tpu.memory_space<smem>>
    %90 = vector.broadcast %89 : f32 to vector<8x1xf32>
    %91 = arith.mulf %79, %90 : vector<8x1xf32>
    %c7 = arith.constant 7 : index
    %92 = memref.load %arg6[%c7] : memref<16xf32, #tpu.memory_space<smem>>
    %93 = vector.broadcast %92 : f32 to vector<8x1xf32>
    %94 = arith.mulf %88, %93 : vector<8x1xf32>
    %95 = arith.addf %91, %94 : vector<8x1xf32>
    %c8 = arith.constant 8 : index
    %96 = memref.load %arg6[%c8] : memref<16xf32, #tpu.memory_space<smem>>
    %97 = vector.broadcast %96 : f32 to vector<8x1xf32>
    %98 = arith.mulf %70, %97 : vector<8x1xf32>
    %99 = arith.addf %95, %98 : vector<8x1xf32>
    %c3 = arith.constant 3 : index
    %100 = memref.load %arg6[%c3] : memref<16xf32, #tpu.memory_space<smem>>
    %101 = vector.broadcast %100 : f32 to vector<8x1xf32>
    %102 = arith.addf %99, %101 : vector<8x1xf32>
    %c9 = arith.constant 9 : index
    %103 = memref.load %arg6[%c9] : memref<16xf32, #tpu.memory_space<smem>>
    %104 = vector.broadcast %103 : f32 to vector<8x1xf32>
    %105 = arith.mulf %79, %104 : vector<8x1xf32>
    %c10 = arith.constant 10 : index
    %106 = memref.load %arg6[%c10] : memref<16xf32, #tpu.memory_space<smem>>
    %107 = vector.broadcast %106 : f32 to vector<8x1xf32>
    %108 = arith.mulf %88, %107 : vector<8x1xf32>
    %109 = arith.addf %105, %108 : vector<8x1xf32>
    %c11 = arith.constant 11 : index
    %110 = memref.load %arg6[%c11] : memref<16xf32, #tpu.memory_space<smem>>
    %111 = vector.broadcast %110 : f32 to vector<8x1xf32>
    %112 = arith.mulf %70, %111 : vector<8x1xf32>
    %113 = arith.addf %109, %112 : vector<8x1xf32>
    %c4 = arith.constant 4 : index
    %114 = memref.load %arg6[%c4] : memref<16xf32, #tpu.memory_space<smem>>
    %115 = vector.broadcast %114 : f32 to vector<8x1xf32>
    %116 = arith.addf %113, %115 : vector<8x1xf32>
    %c12 = arith.constant 12 : index
    %117 = memref.load %arg6[%c12] : memref<16xf32, #tpu.memory_space<smem>>
    %118 = vector.broadcast %117 : f32 to vector<8x1xf32>
    %119 = arith.mulf %79, %118 : vector<8x1xf32>
    %c13 = arith.constant 13 : index
    %120 = memref.load %arg6[%c13] : memref<16xf32, #tpu.memory_space<smem>>
    %121 = vector.broadcast %120 : f32 to vector<8x1xf32>
    %122 = arith.mulf %88, %121 : vector<8x1xf32>
    %123 = arith.addf %119, %122 : vector<8x1xf32>
    %c14 = arith.constant 14 : index
    %124 = memref.load %arg6[%c14] : memref<16xf32, #tpu.memory_space<smem>>
    %125 = vector.broadcast %124 : f32 to vector<8x1xf32>
    %126 = arith.mulf %70, %125 : vector<8x1xf32>
    %127 = arith.addf %123, %126 : vector<8x1xf32>
    %c5 = arith.constant 5 : index
    %128 = memref.load %arg6[%c5] : memref<16xf32, #tpu.memory_space<smem>>
    %129 = vector.broadcast %128 : f32 to vector<8x1xf32>
    %130 = arith.addf %127, %129 : vector<8x1xf32>
    %131 = arith.maximumf %102, %116 : vector<8x1xf32>
    %132 = arith.maximumf %131, %130 : vector<8x1xf32>
    %133 = arith.subf %102, %132 : vector<8x1xf32>
    %134 = math.exp %133 : vector<8x1xf32>
    %135 = arith.subf %116, %132 : vector<8x1xf32>
    %136 = math.exp %135 : vector<8x1xf32>
    %137 = arith.subf %130, %132 : vector<8x1xf32>
    %138 = math.exp %137 : vector<8x1xf32>
    %139 = arith.addf %134, %136 : vector<8x1xf32>
    %140 = arith.addf %139, %138 : vector<8x1xf32>
    %141 = arith.divf %134, %140 : vector<8x1xf32>
    %142 = arith.divf %136, %140 : vector<8x1xf32>
    %143 = arith.divf %138, %140 : vector<8x1xf32>
    %144 = arith.mulf %79, %141 : vector<8x1xf32>
    %145 = arith.mulf %88, %142 : vector<8x1xf32>
    %146 = arith.addf %144, %145 : vector<8x1xf32>
    %147 = arith.mulf %70, %143 : vector<8x1xf32>
    %148 = arith.addf %146, %147 : vector<8x1xf32>
    %149 = vector.broadcast %81 : f32 to vector<8x1xf32>
    %150 = arith.mulf %148, %149 : vector<8x1xf32>
    %151 = vector.broadcast %82 : f32 to vector<8x1xf32>
    %152 = arith.addf %150, %151 : vector<8x1xf32>
    %cst_38 = arith.constant 0.000000e+00 : f32
    %153 = vector.broadcast %cst_38 : f32 to vector<8x128xf32>
    %c0_39 = arith.constant 0 : index
    %c0_40 = arith.constant 0 : index
    %154 = vector.load %arg7[%c0_39, %c0_40] : memref<8x256xf32, #tpu.memory_space<vmem>>, vector<8x128xf32>
    tpu.vector_store %arg7[%c0_39, %c0_40], %153 {strides = array<i32>} : memref<8x256xf32, #tpu.memory_space<vmem>>, vector<8x128xf32>,
    %c0_41 = arith.constant 0 : index
    %c0_42 = arith.constant 0 : index
    %155 = vector.load %arg7[%c0_41, %c0_42] : memref<8x256xf32, #tpu.memory_space<vmem>>, vector<8x1xf32>
    tpu.vector_store %arg7[%c0_41, %c0_42], %152 {strides = array<i32>} : memref<8x256xf32, #tpu.memory_space<vmem>>, vector<8x1xf32>,
    %c0_43 = arith.constant 0 : index
    %c8_44 = arith.constant 8 : index
    %156 = vector.load %arg7[%c0_43, %c8_44] : memref<8x256xf32, #tpu.memory_space<vmem>>, vector<8x1xf32>
    tpu.vector_store %arg7[%c0_43, %c8_44], %141 {strides = array<i32>} : memref<8x256xf32, #tpu.memory_space<vmem>>, vector<8x1xf32>,
    %c0_45 = arith.constant 0 : index
    %c9_46 = arith.constant 9 : index
    %157 = vector.load %arg7[%c0_45, %c9_46] : memref<8x256xf32, #tpu.memory_space<vmem>>, vector<8x1xf32>
    tpu.vector_store %arg7[%c0_45, %c9_46], %142 {strides = array<i32>} : memref<8x256xf32, #tpu.memory_space<vmem>>, vector<8x1xf32>,
    %c0_47 = arith.constant 0 : index
    %c10_48 = arith.constant 10 : index
    %158 = vector.load %arg7[%c0_47, %c10_48] : memref<8x256xf32, #tpu.memory_space<vmem>>, vector<8x1xf32>
    tpu.vector_store %arg7[%c0_47, %c10_48], %143 {strides = array<i32>} : memref<8x256xf32, #tpu.memory_space<vmem>>, vector<8x1xf32>,
    %c0_49 = arith.constant 0 : index
    %c16 = arith.constant 16 : index
    %159 = vector.load %arg7[%c0_49, %c16] : memref<8x256xf32, #tpu.memory_space<vmem>>, vector<8x8xf32>
    tpu.vector_store %arg7[%c0_49, %c16], %37 {strides = array<i32>} : memref<8x256xf32, #tpu.memory_space<vmem>>, vector<8x8xf32>,
    %c0_50 = arith.constant 0 : index
    %c128 = arith.constant 128 : index
    %160 = vector.load %arg7[%c0_50, %c128] : memref<8x256xf32, #tpu.memory_space<vmem>>, vector<8x128xf32>
    tpu.vector_store %arg7[%c0_50, %c128], %63 {strides = array<i32>} : memref<8x256xf32, #tpu.memory_space<vmem>>, vector<8x128xf32>,
    return
  }
}

</mosaic_0001>

<bundles_post_ra>
// kernel: ufm3_forward.1
= control target key start
LH: loop header
LB: loop body
LE: loop exit
PB: predicated region body
PF: predicated region fallthrough
CT: control target
= control target key end

     0   :  { %12 = vsyncpa [#allocation3], 0  ;;  %s1298_s27 = smov [#allocation2]   ;;  %s2022_s0 = inlined_call_operand.vmem [shape: s32[64,1], index: 0, kind: input, shape index: {}]   ;;  %s2023_s1 = inlined_call_operand.vmem [shape: f32[50,32], index: 1, kind: input, shape index: {}]   ;;  %s2024_s2 = inlined_call_operand.vmem [shape: f32[88,32], index: 2, kind: input, shape index: {}]   ;;  %s2025_s3 = inlined_call_operand.vmem [shape: f32[8,12,128], index: 3, kind: input, shape index: {}]   ;;  %s2026_s4 = inlined_call_operand.vmem [shape: f32[8,128], index: 4, kind: input, shape index: {}]   ;;  %s2027_s5 = inlined_call_operand.vmem [shape: f32[104,128], index: 5, kind: input, shape index: {}]   ;;  %s2028_s6 = inlined_call_operand.vmem [shape: f32[16], index: 6, kind: input, shape index: {}]   ;;  %s2029_s7 = inlined_call_operand.vmem [shape: f32[8,256], index: 7, kind: output, shape index: {}]  }
   0x1   :  { %s30_s26 = sshll.u32 %s2028_s6, 4  ;;  %s31_s26 = int_to_ptr.vmem [resolvable:$true] %s30_s26 }
   0x2   :  { %33 = dma.vmem_to_smem %s31_s26, 16, %s1298_s27, [#allocation3]  }
   0x3   :  { %1296 = dma.done.wait [#allocation3], 16  }
   0x4   :  { %1297 = vsyncadd [#allocation3], 4294967280 }
   0x5   :  { %38 = sfence }
   0x6   :  { %v40_v0 = vld [vmem:[%s2022_s0 + $0x8] sm:$0xff]  ;;  %v39_v1 = vld [vmem:[%s2022_s0] sm:$0xff]  ;;  %vm129_vm0 = vcmask 1041408   ;;  %v1299_v2 = vmov 0   ;;  %v1300_v3 = vmov 0.0   ;;  %v41_v4 = vld [vmem:[%s2022_s0 + $0x10] sm:$0xff]  ;;  %v47_v17 = vlaneseq }
   0x7   :  { %1236 = vset.pattern.permute.xlu1 %v1299_v2  ;;  %1235 = vset.pattern.permute.xlu0 %v1299_v2  ;;  %1114 = vst [vmem:[%s2029_s7] sm:$0xff] %v1300_v3  ;;  %v103_v5 = vld [vmem:[%s2023_s1 + $0x30] sm:$0x3]  ;;  %v102_v6 = vld [vmem:[%s2023_s1 + $0x28] sm:$0xff]  ;;  %v101_v7 = vld [vmem:[%s2023_s1 + $0x20] sm:$0xff]  ;;  %vm104_vm1 = vcmask 408576   ;;  %vm195_vm10 = vcmask 1041409  }
   0x8   :  { %53 = vperm.xlu1 %1236, %v40_v0   ;;  %50 = vperm.xlu0 %1235, %v39_v1   ;;  %v100_v8 = vld [vmem:[%s2023_s1 + $0x18] sm:$0xff]  ;;  %v44_v9 = vld [vmem:[%s2022_s0 + $0x28] sm:$0xff]  ;;  %v43_v10 = vld [vmem:[%s2022_s0 + $0x20] sm:$0xff]  ;;  %v1394_v18 = vand.u32 127, %v47_v17  ;;  %vm198_vm11 = vcmask 1042434   ;;  %vm215_vm12 = vcmask 261120  }
   0x9   :  { %1237 = vset.pattern.permute.xlu2 %v1299_v2  ;;  %1188 = vmatpush.msk.msra.mxu0 %vm129_vm0, %v103_v5  ;;  %v99_v11 = vld [vmem:[%s2023_s1 + $0x10] sm:$0xff]  ;;  %v98_v13 = vld [vmem:[%s2023_s1 + $0x8] sm:$0xff]  ;;  %v46_v14 = vld [vmem:[%s2022_s0 + $0x38] sm:$0xff]  ;;  %vm201_vm13 = vcmask 1043459   ;;  %vm2035_vm14 = vcmask 1044484   ;;  %vm2034_vm15 = vcmask 1045509  }
   0xa   :  { %56 = vperm.xlu2 %1237, %v41_v4   ;;  %1220 = vmatpush.msk.msra.mxu3 %vm129_vm0, %v103_v5  ;;  %v45_v12 = vld [vmem:[%s2022_s0 + $0x30] sm:$0xff]  ;;  %v42_v15 = vld [vmem:[%s2022_s0 + $0x18] sm:$0xff]  ;;  %v97_v16 = vld [vmem:[%s2023_s1] sm:$0xff]  ;;  %vm2033_vm0 = vcmask 1046534   ;;  %s1209_s0 = sld [smem:[#allocation2 + $0x7]] }
   0xb   :  { %143 = vmatpush.msra.mxu0 %v102_v6  ;;  %v181_v35 = vld [vmem:[%s2024_s2 + $0x38] sm:$0xff]  ;;  %v180_v36 = vld [vmem:[%s2024_s2 + $0x30] sm:$0xff]  ;;  %v179_v37 = vld [vmem:[%s2024_s2 + $0x28] sm:$0xff]  ;;  %s1217_s1 = sld [smem:[#allocation2 + $0xd]] }
   0xc   :  { %1221 = vmatpush.msra.mxu3 %v102_v6  ;;  %1227 = vmatpush.msra.mxu2 %v181_v35  ;;  %v178_v38 = vld [vmem:[%s2024_s2 + $0x20] sm:$0xff]  ;;  %v177_v40 = vld [vmem:[%s2024_s2 + $0x18] sm:$0xff]  ;;  %v176_v41 = vld [vmem:[%s2024_s2 + $0x10] sm:$0xff]  ;;  %s1208_s12 = sld [smem:[#allocation2 + $0x6]] }
   0xd   :  { %144 = vmatpush.msra.mxu0 %v101_v7  ;;  %230 = vmatpush.msra.mxu1 %v177_v40  ;;  %v175_v42 = vld [vmem:[%s2024_s2 + $0x8] sm:$0xff]  ;;  %v1238_v43 = vld [vmem:[%s2024_s2 + $0x50] ss:$0 sm:$0xff]  ;;  %v174_v45 = vld [vmem:[%s2024_s2] sm:$0xff]  ;;  %s1212_s13 = sld [smem:[#allocation2 + $0x9]] }
   0xe   :  { %1222 = vmatpush.msra.mxu3 %v101_v7  ;;  %1228 = vmatpush.msra.mxu2 %v180_v36  ;;  %s1216_s14 = sld [smem:[#allocation2 + $0xc]] }
   0xf   :  { %145 = vmatpush.msra.mxu0 %v100_v8  ;;  %231 = vmatpush.msra.mxu1 %v176_v41  ;;  %s1807_s15 = sld [smem:[#allocation2 + $0x8]] }
  0x10   :  { %65 = vperm.xlu1 %1236, %v44_v9   ;;  %62 = vperm.xlu0 %1235, %v43_v10   ;;  %s1809_s16 = sld [smem:[#allocation2 + $0x3]] }
  0x11   :  { %146 = vmatpush.msra.mxu0 %v99_v11  ;;  %1223 = vmatpush.msra.mxu3 %v100_v8  ;;  %s1813_s17 = sld [smem:[#allocation2 + $0xb]] }
  0x12   :  { %68 = vperm.xlu2 %1237, %v45_v12   ;;  %1229 = vmatpush.msra.mxu2 %v179_v37  ;;  %s1815_s18 = sld [smem:[#allocation2 + $0x4]] }
  0x13   :  { %147 = vmatpush.msra.mxu0 %v98_v13  ;;  %1224 = vmatpush.msra.mxu3 %v99_v11  ;;  %s1819_s19 = sld [smem:[#allocation2 + $0xe]] }
  0x14   :  { %1230 = vmatpush.msra.mxu2 %v178_v38  ;;  %232 = vmatpush.msra.mxu1 %v175_v42  ;;  %s1825_s20 = sld [smem:[#allocation2 + $0x5]] }
  0x15   :  { %1225 = vmatpush.msra.mxu3 %v98_v13  ;;  %148 = vmatpush.msra.mxu0 %v97_v16  ;;  %s1206_s21 = sld [smem:[#allocation2 + $0x1]] }
  0x16   :  { %233 = vmatpush.msra.mxu1 %v174_v45  ;;  %s1207_s22 = sld [smem:[#allocation2 + $0x2]] }
  0x17   :  { %1226 = vmatpush.msra.mxu3 %v97_v16 }
  0x18   :  { %71 = vperm.xlu1 %1236, %v46_v14   ;;  %59 = vperm.xlu0 %1235, %v42_v15  }
  0x19   :  { %267 = vmatpush.msrb.mxu1 %v181_v35 }
  0x1b   :  { %268 = vmatpush.msrb.mxu1 %v180_v36 }
  0x1d   :  { %269 = vmatpush.msrb.mxu1 %v179_v37 }
  0x1f   :  { %270 = vmatpush.msrb.mxu1 %v178_v38 }
  0x64   :  { %v57_v24 = vpop.permute.xlu2 %56 }
  0x65   :  { %vm75_vm5 = vcmp.eq.s32.totalorder %v1394_v18, %v57_v24 }
  0x66   :  { %v1182_v27 = vsel %vm75_vm5, 1.0, %v1300_v3  ;;  %vm987_vm5 = vcmp.ge.s32.totalorder %v1394_v18, 100 }
  0x6c   :  { %v69_v29 = vpop.permute.xlu2 %68 }
  0x6d   :  { %vm79_vm7 = vcmp.eq.s32.totalorder %v1394_v18, %v69_v29  ;;  %v1239_v29 = vld [vmem:[%s2024_s2 + $0x48] ss:$0 sm:$0xff] }
  0x6e   :  { %v1186_v31 = vsel %vm79_vm7, 1.0, %v1300_v3 }
  0x7a   :  { %v51_v19 = vpop.permute.xlu0 %50  ;;  %v54_v20 = vpop.permute.xlu1 %53 }
  0x7b   :  { %vm73_vm2 = vcmp.eq.s32.totalorder %v1394_v18, %v51_v19  ;;  %vm74_vm3 = vcmp.eq.s32.totalorder %v1394_v18, %v54_v20 }
  0x7c   :  { %v1180_v21 = vsel %vm73_vm2, 1.0, %v1300_v3  ;;  %v1181_v22 = vsel %vm74_vm3, 1.0, %v1300_v3  ;;  %vm376_vm2 = vcmask 64512   ;;  %vm625_vm3 = vcmask 1043456  }
  0x7d   :  { %1189 = vmatmul.msk.f32.vlgmr.msra.gmra.mxu0 %vm104_vm1, %v1180_v21 }
  0x82   :  { %v63_v23 = vpop.permute.xlu0 %62  ;;  %v66_v26 = vpop.permute.xlu1 %65 }
  0x83   :  { %vm77_vm4 = vcmp.eq.s32.totalorder %v1394_v18, %v63_v23  ;;  %vm78_vm6 = vcmp.eq.s32.totalorder %v1394_v18, %v66_v26 }
  0x84   :  { %v1184_v25 = vsel %vm77_vm4, 1.0, %v1300_v3  ;;  %v1185_v28 = vsel %vm78_vm6, 1.0, %v1300_v3  ;;  %vm988_vm6 = vcmp.lt.s32.totalorder %v1394_v18, 108 }
  0x85   :  { %1190 = vmatmul.msk.f32.gmra.mxu0 %vm104_vm1, %v1181_v22  ;;  %1193 = vmatmul.msk.f32.vlgmr.msra.gmra.mxu3 %vm104_vm1, %v1184_v25  ;;  %vm989_vm7 = vmand %vm987_vm5, %vm988_vm6 }
  0x8a   :  { %v60_v30 = vpop.permute.xlu0 %59  ;;  %v72_v33 = vpop.permute.xlu1 %71 }
  0x8b   :  { %vm76_vm8 = vcmp.eq.s32.totalorder %v1394_v18, %v60_v30  ;;  %vm80_vm9 = vcmp.eq.s32.totalorder %v1394_v18, %v72_v33 }
  0x8c   :  { %v1183_v32 = vsel %vm76_vm8, 1.0, %v1300_v3  ;;  %v1187_v34 = vsel %vm80_vm9, 1.0, %v1300_v3  ;;  %vm960_vm8 = vcmp.lt.s32.totalorder %v1394_v18, 100 }
  0x8d   :  { %1191 = vmatmul.msk.f32.gmra.mxu0 %vm104_vm1, %v1182_v27  ;;  %1194 = vmatmul.msk.f32.gmra.mxu3 %vm104_vm1, %v1185_v28  ;;  %v1240_v27 = vld [vmem:[%s2024_s2 + $0x40] ss:$0 sm:$0xff] }
  0x95   :  { %1192 = vmatmul.msk.f32.gmra.mxu0 %vm104_vm1, %v1183_v32  ;;  %1195 = vmatmul.msk.f32.gmra.mxu3 %vm104_vm1, %v1186_v31 }
  0x9d   :  { %1196 = vmatmul.msk.f32.gmra.mxu3 %vm104_vm1, %v1187_v34  ;;  %vm2032_vm1 = vcmask 1047559  }
  0xfa   :  { %v1432_v39 = vpop.f32.mrf.mxu0 }
  0xfb   :  { %v997_v47 = vmul.f32 %v1238_v43, %v1432_v39 }
 0x102   :  { %v1446_v44 = vpop.f32.mrf.mxu0 }
 0x103   :  { %v998_v46 = vmul.f32 %v1238_v43, %v1446_v44  ;;  %v194_v60 = vrot.slane %v1446_v44, 7 }
 0x105   :  { %v1013_v48 = vrot.slane %v998_v46, 7  ;;  %v196_v5 = vsel %vm195_vm10, %v194_v60, %v1432_v39 }
 0x107   :  { %v1014_v49 = vsel %vm195_vm10, %v1013_v48, %v997_v47 }
 0x108   :  { %v162_v50 = vpop.f32.mrf.mxu3 }
 0x109   :  { %v1001_v56 = vmul.f32 %v1238_v43, %v162_v50  ;;  %v203_v11 = vrot.slane %v162_v50, 4 }
 0x10a   :  { %v156_v51 = vpop.f32.mrf.mxu0 }
 0x10b   :  { %v999_v52 = vmul.f32 %v1238_v43, %v156_v51  ;;  %v1019_v62 = vrot.slane %v1001_v56, 4  ;;  %v197_v63 = vrot.slane %v156_v51, 6 }
 0x10d   :  { %v1015_v53 = vrot.slane %v999_v52, 6  ;;  %v199_v8 = vsel %vm198_vm11, %v197_v63, %v196_v5 }
 0x10f   :  { %v1016_v54 = vsel %vm198_vm11, %v1015_v53, %v1014_v49 }
 0x110   :  { %v165_v55 = vpop.f32.mrf.mxu3 }
 0x111   :  { %v1002_v58 = vmul.f32 %v1238_v43, %v165_v55  ;;  %v206_v15 = vrot.slane %v165_v55, 3 }
 0x112   :  { %v159_v57 = vpop.f32.mrf.mxu0 }
 0x113   :  { %v1000_v59 = vmul.f32 %v1238_v43, %v159_v57  ;;  %1201 = vmatmul.msk.f32.vlgmr.msra.gmra.mxu2 %vm215_vm12, %v159_v57  ;;  %v1021_v0 = vrot.slane %v1002_v58, 3  ;;  %v200_v1 = vrot.slane %v159_v57, 5 }
 0x115   :  { %v1017_v61 = vrot.slane %v1000_v59, 5  ;;  %v202_v9 = vsel %vm201_vm13, %v200_v1, %v199_v8 }
 0x116   :  { %v205_v14 = vsel %vm2035_vm14, %v203_v11, %v202_v9 }
 0x117   :  { %v1018_v2 = vsel %vm201_vm13, %v1017_v61, %v1016_v54  ;;  %v208_v20 = vsel %vm2034_vm15, %v206_v15, %v205_v14 }
 0x118   :  { %v168_v3 = vpop.f32.mrf.mxu3  ;;  %v1020_v4 = vsel %vm2035_vm14, %v1019_v62, %v1018_v2 }
 0x119   :  { %v1003_v6 = vmul.f32 %v1238_v43, %v168_v3  ;;  %v1022_v7 = vsel %vm2034_vm15, %v1021_v0, %v1020_v4  ;;  %v209_v13 = vrot.slane %v168_v3, 2 }
 0x11b   :  { %v1023_v10 = vrot.slane %v1003_v6, 2  ;;  %1202 = vmatmul.msk.f32.gmra.mxu2 %vm215_vm12, %v162_v50  ;;  %v211_v21 = vsel %vm2033_vm0, %v209_v13, %v208_v20 }
 0x11d   :  { %v1024_v12 = vsel %vm2033_vm0, %v1023_v10, %v1022_v7 }
 0x120   :  { %v171_v16 = vpop.f32.mrf.mxu3 }
 0x121   :  { %v212_v17 = vrot.slane %v171_v16, 1  ;;  %v1004_v19 = vmul.f32 %v1238_v43, %v171_v16 }
 0x123   :  { %v1025_v22 = vrot.slane %v1004_v19, 1  ;;  %1203 = vmatmul.msk.f32.gmra.mxu2 %vm215_vm12, %v165_v55  ;;  %v214_v23 = vsel %vm2032_vm1, %v212_v17, %v211_v21 }
 0x124   :  { %1197 = vmatmul.msk.f32.vlgmr.msra.gmra.mxu1 %vm215_vm12, %v214_v23 }
 0x125   :  { %v1473_v24 = vsel %vm2032_vm1, %v1025_v22, %v1024_v12 }
 0x12b   :  { %1204 = vmatmul.msk.f32.gmra.mxu2 %vm215_vm12, %v168_v3 }
 0x12c   :  { %1198 = vmatmul.msk.f32.vlgmr.msrb.gmra.mxu1 %vm215_vm12, %v1432_v39 }
 0x133   :  { %1205 = vmatmul.msk.f32.gmra.mxu2 %vm215_vm12, %v171_v16 }
 0x134   :  { %1199 = vmatmul.msk.f32.gmra.mxu1 %vm215_vm12, %v1446_v44 }
 0x13c   :  { %1200 = vmatmul.msk.f32.gmra.mxu1 %vm215_vm12, %v156_v51 }
 0x196   :  { %v281_v25 = vpop.f32.mrf.mxu2 }
 0x197   :  { %v282_v32 = vadd.f32 %v1239_v29, %v281_v25 }
 0x19e   :  { %v284_v26 = vpop.f32.mrf.mxu2 }
 0x19f   :  { %v285_v40 = vadd.f32 %v1239_v29, %v284_v26 }
 0x1a1   :  { %v235_v28 = vpop.f32.mrf.mxu1 }
 0x1a2   :  { %v236_v30 = vadd.f32 %v1240_v27, %v235_v28 }
 0x1a4   :  { %v299_v31 = vrot.slane %v236_v30, 3  ;;  %v300_v35 = vrot.slane %v236_v30, 4  ;;  %v297_v43 = vrot.slane %v236_v30, 1  ;;  %v301_v45 = vrot.slane %v236_v30, 5 }
 0x1a5   :  { %v304_v51 = vperm.slane %v236_v30, 0  ;;  %v298_v52 = vrot.slane %v236_v30, 2  ;;  %v303_v58 = vrot.slane %v236_v30, 7  ;;  %v302_v3 = vrot.slane %v236_v30, 6 }
 0x1a6   :  { %v287_v33 = vpop.f32.mrf.mxu2  ;;  %v307_v34 = vperm.slane %v299_v31, 0  ;;  %v308_v39 = vperm.slane %v300_v35, 0  ;;  %v305_v49 = vperm.slane %v297_v43, 0  ;;  %v309_v56 = vperm.slane %v301_v45, 0  ;;  %v613_v43 = vld [vmem:[%s2025_s3 + $0x20] sm:$0xff] }
 0x1a7   :  { %v288_v53 = vadd.f32 %v1239_v29, %v287_v33  ;;  %v306_v60 = vperm.slane %v298_v52, 0  ;;  %v311_v2 = vperm.slane %v303_v58, 0  ;;  %v310_v8 = vperm.slane %v302_v3, 0 }
 0x1a8   :  { %v323_v36 = vmul.f32 %v307_v34, %v282_v32  ;;  %v324_v42 = vmul.f32 %v308_v39, %v285_v40  ;;  %v611_v39 = vld [vmem:[%s2025_s3 + $0x10] sm:$0xff]  ;;  %v614_v40 = vld [vmem:[%s2025_s3 + $0x28] sm:$0xf] }
 0x1a9   :  { %v272_v37 = vpop.f32.mrf.mxu1  ;;  %v325_v0 = vmul.f32 %v309_v56, %v288_v53  ;;  %v617_v53 = vld [vmem:[%s2025_s3 + $0x40] sm:$0xff] }
 0x1aa   :  { %v337_v38 = vsel %vm215_vm12, %v323_v36, 0.0  ;;  %v273_v46 = vadd.f32 %v1239_v29, %v272_v37  ;;  %v340_v48 = vsel %vm215_vm12, %v324_v42, 0.0  ;;  %v610_v42 = vld [vmem:[%s2025_s3 + $0x8] sm:$0xf] }
 0x1ab   :  { %338 = vadd.xlane.f32.xlu2 %v337_v38  ;;  %v343_v6 = vsel %vm215_vm12, %v325_v0, 0.0  ;;  %v612_v38 = vld [vmem:[%s2025_s3 + $0x18] sm:$0xf] }
 0x1ac   :  { %v320_v55 = vmul.f32 %v304_v51, %v273_v46  ;;  %v642_v46 = vsel %vm625_vm3, %v614_v40, 0.0  ;;  %v624_v0 = vld [vmem:[%s2025_s3 + $0x78] sm:$0xf] }
 0x1ad   :  { %v643_v51 = vadd.f32 %v642_v46, %v613_v43 }
 0x1ae   :  { %v290_v41 = vpop.f32.mrf.mxu2  ;;  %v328_v63 = vsel %vm215_vm12, %v320_v55, 0.0 }
 0x1af   :  { %v291_v4 = vadd.f32 %v1239_v29, %v290_v41  ;;  %v634_v41 = vsel %vm625_vm3, %v612_v38, 0.0 }
 0x1b0   :  { %v635_v45 = vadd.f32 %v634_v41, %v611_v39 }
 0x1b1   :  { %v275_v44 = vpop.f32.mrf.mxu1  ;;  %v326_v10 = vmul.f32 %v310_v8, %v291_v4  ;;  %v623_v8 = vld [vmem:[%s2025_s3 + $0x70] sm:$0xff] }
 0x1b2   :  { %v276_v47 = vadd.f32 %v1239_v29, %v275_v44  ;;  %v616_v44 = vld [vmem:[%s2025_s3 + $0x38] sm:$0xf]  ;;  %v636_v56 = vrot.slane %v635_v45, 4 }
 0x1b3   :  { %341 = vadd.xlane.f32.xlu2 %v340_v48  ;;  %v346_v11 = vsel %vm215_vm12, %v326_v10, 0.0  ;;  %v615_v48 = vld [vmem:[%s2025_s3 + $0x30] sm:$0xff]  ;;  %v650_v52 = vsel %vm625_vm3, %v616_v44, 0.0 }
 0x1b4   :  { %v321_v50 = vmul.f32 %v305_v49, %v276_v47  ;;  %v609_v47 = vld [vmem:[%s2025_s3] sm:$0xff]  ;;  %v618_v49 = vld [vmem:[%s2025_s3 + $0x48] sm:$0xf] }
 0x1b5   :  { %v658_v58 = vsel %vm625_vm3, %v618_v49, 0.0 }
 0x1b6   :  { %v331_v54 = vsel %vm215_vm12, %v321_v50, 0.0  ;;  %v293_v57 = vpop.f32.mrf.mxu2  ;;  %v626_v50 = vsel %vm625_vm3, %v610_v42, 0.0 }
 0x1b7   :  { %332 = vadd.xlane.f32.xlu0 %v331_v54  ;;  %v294_v61 = vadd.f32 %v1239_v29, %v293_v57  ;;  %v620_v54 = vld [vmem:[%s2025_s3 + $0x58] sm:$0xf]  ;;  %v627_v55 = vadd.f32 %v626_v50, %v609_v47  ;;  %v651_v57 = vadd.f32 %v650_v52, %v615_v48 }
 0x1b9   :  { %v278_v59 = vpop.f32.mrf.mxu1  ;;  %v327_v7 = vmul.f32 %v311_v2, %v294_v61  ;;  %v644_v61 = vrot.slane %v643_v51, 4  ;;  %v637_v2 = vadd.f32 %v636_v56, %v635_v45  ;;  %v652_v3 = vrot.slane %v651_v57, 4 }
 0x1ba   :  { %v279_v62 = vadd.f32 %v1239_v29, %v278_v59  ;;  %v619_v59 = vld [vmem:[%s2025_s3 + $0x50] sm:$0xff] }
 0x1bb   :  { %329 = vadd.xlane.f32.xlu2 %v328_v63  ;;  %v349_v9 = vsel %vm215_vm12, %v327_v7, 0.0  ;;  %v666_v63 = vsel %vm625_vm3, %v620_v54, 0.0  ;;  %v621_v7 = vld [vmem:[%s2025_s3 + $0x60] sm:$0xff] }
 0x1bc   :  { %v322_v1 = vmul.f32 %v306_v60, %v279_v62  ;;  %v622_v60 = vld [vmem:[%s2025_s3 + $0x68] sm:$0xf]  ;;  %v659_v62 = vadd.f32 %v658_v58, %v617_v53  ;;  %v667_v4 = vadd.f32 %v666_v63, %v619_v59  ;;  %s993_s3 = sld [smem:[#allocation2]] }
 0x1bd   :  { %v674_v10 = vsel %vm625_vm3, %v622_v60, 0.0 }
 0x1be   :  { %v334_v5 = vsel %vm215_vm12, %v322_v1, 0.0  ;;  %v628_v1 = vrot.slane %v627_v55, 4 }
 0x1bf   :  { %335 = vadd.xlane.f32.xlu1 %v334_v5  ;;  %344 = vadd.xlane.f32.xlu0 %v343_v6  ;;  %v645_v5 = vadd.f32 %v644_v61, %v643_v51  ;;  %v660_v6 = vrot.slane %v659_v62, 4 }
 0x1c3   :  { %350 = vadd.xlane.f32.xlu2 %v349_v9  ;;  %v629_v9 = vadd.f32 %v628_v1, %v627_v55 }
 0x1c7   :  { %347 = vadd.xlane.f32.xlu1 %v346_v11  ;;  %v682_v11 = vsel %vm625_vm3, %v624_v0, 0.0 }
 0x21e   :  { %v1496_v12 = vpop.xlane.xlu2 %338 }
 0x21f   :  { %v363_v21 = vperm.slane %v1496_v12, %v1394_v18 }
 0x226   :  { %v1498_v13 = vpop.xlane.xlu2 %341 }
 0x227   :  { %v364_v26 = vperm.slane %v1498_v13, %v1394_v18 }
 0x22a   :  { %v1500_v14 = vpop.xlane.xlu0 %332 }
 0x22b   :  { %v361_v17 = vperm.slane %v1500_v14, %v1394_v18 }
 0x22e   :  { %v1502_v15 = vpop.xlane.xlu2 %329 }
 0x22f   :  { %v360_v16 = vperm.slane %v1502_v15, %v1394_v18 }
 0x231   :  { %v368_v22 = vsel %vm195_vm10, %v361_v17, %v360_v16  ;;  %v1594_v16 = vsel %vm215_vm12, %v1473_v24, 0.0  ;;  %v638_v17 = vrot.slane %v637_v2, 2 }
 0x232   :  { %v1508_v19 = vpop.xlane.xlu1 %335  ;;  %v1519_v27 = vpop.xlane.xlu0 %344 }
 0x233   :  { %v362_v20 = vperm.slane %v1508_v19, %v1394_v18  ;;  %v365_v30 = vperm.slane %v1519_v27, %v1394_v18  ;;  %v639_v24 = vadd.f32 %v638_v17, %v637_v2 }
 0x235   :  { %v369_v23 = vsel %vm198_vm11, %v362_v20, %v368_v22  ;;  %v646_v20 = vrot.slane %v645_v5, 2  ;;  %v668_v22 = vrot.slane %v667_v4, 4  ;;  %v640_v59 = vrot.slane %v639_v24, 1 }
 0x236   :  { %v370_v25 = vsel %vm201_vm13, %v363_v21, %v369_v23  ;;  %v1521_v28 = vpop.xlane.xlu2 %350  ;;  %v653_v21 = vadd.f32 %v652_v3, %v651_v57  ;;  %v1301_v23 = vmov 12.0  }
 0x237   :  { %v371_v29 = vsel %vm2035_vm14, %v364_v26, %v370_v25  ;;  %v367_v33 = vperm.slane %v1521_v28, %v1394_v18  ;;  %1242 = vrcp.f32 %v1301_v23  ;;  %v630_v26 = vrot.slane %v629_v9, 2 }
 0x238   :  { %v372_v34 = vsel %vm2034_vm15, %v365_v30, %v371_v29  ;;  %v661_v29 = vadd.f32 %v660_v6, %v659_v62  ;;  %v675_v30 = vadd.f32 %v674_v10, %v621_v7  ;;  %v654_v43 = vrot.slane %v653_v21, 2 }
 0x239   :  { %v669_v47 = vadd.f32 %v668_v22, %v667_v4  ;;  %v631_v52 = vadd.f32 %v630_v26, %v629_v9  ;;  %v647_v54 = vadd.f32 %v646_v20, %v645_v5  ;;  %v705_v20 = vld [vmem:[%s2026_s4] sm:$0xff]  ;;  %s1213_s4 = sld [smem:[#allocation2 + $0xa]] }
 0x23a   :  { %v1526_v31 = vpop.xlane.xlu1 %347  ;;  %v662_v46 = vrot.slane %v661_v29, 2  ;;  %v676_v55 = vrot.slane %v675_v30, 4 }
 0x23b   :  { %v366_v32 = vperm.slane %v1526_v31, %v1394_v18  ;;  %v632_v58 = vrot.slane %v631_v52, 1  ;;  %v670_v61 = vrot.slane %v669_v47, 2 }
 0x23c   :  { %v663_v60 = vadd.f32 %v662_v46, %v661_v29  ;;  %v677_v1 = vadd.f32 %v676_v55, %v675_v30  ;;  %v713_v46 = vrot.slane %v705_v20, 7 }
 0x23d   :  { %v373_v35 = vsel %vm2033_vm0, %v366_v32, %v372_v34  ;;  %v683_v32 = vadd.f32 %v682_v11, %v623_v8  ;;  %v1600_v48 = vpop.eup %1242  ;;  %v633_v3 = vadd.f32 %v632_v58, %v631_v52 }
 0x23e   :  { %v374_v36 = vsel %vm2032_vm1, %v367_v33, %v373_v35  ;;  %v691_v5 = vmul.f32 12.0, %v1600_v48  ;;  %v664_v7 = vrot.slane %v663_v60, 1  ;;  %v678_v8 = vrot.slane %v677_v1, 2 }
 0x23f   :  { %v377_v37 = vsel %vm376_vm2, %v374_v36, -inf  ;;  %vm695_vm4 = vweird.f32 %v1600_v48 }
 0x240   :  { %378 = vmax.xlane.f32.xlu0 %v377_v37  ;;  %v692_v17 = vsub.f32 1.0, %v691_v5  ;;  %v665_v30 = vadd.f32 %v664_v7, %v663_v60 }
 0x242   :  { %v693_v29 = vmul.f32 %v1600_v48, %v692_v17 }
 0x2b3   :  { %v379_v25 = vpop.xlane.xlu0 %378 }
 0x2b4   :  { %v383_v33 = vperm.slane %v379_v25, 2  ;;  %v382_v34 = vperm.slane %v379_v25, 1  ;;  %v381_v35 = vperm.slane %v379_v25, 0  ;;  %v385_v36 = vperm.slane %v379_v25, 4 }
 0x2b5   :  { %v386_v37 = vperm.slane %v379_v25, 5  ;;  %v384_v38 = vperm.slane %v379_v25, 3  ;;  %v388_v39 = vperm.slane %v379_v25, 7  ;;  %v387_v45 = vperm.slane %v379_v25, 6 }
 0x2b6   :  { %v399_v40 = vsub.f32 %v1508_v19, %v383_v33  ;;  %v398_v41 = vsub.f32 %v1500_v14, %v382_v34  ;;  %v397_v42 = vsub.f32 %v1502_v15, %v381_v35  ;;  %v401_v44 = vsub.f32 %v1498_v13, %v385_v36 }
 0x2b7   :  { %v402_v53 = vsub.f32 %v1519_v27, %v386_v37  ;;  %v400_v19 = vsub.f32 %v1496_v12, %v384_v38  ;;  %v404_v14 = vsub.f32 %v1521_v28, %v388_v39  ;;  %v655_v15 = vadd.f32 %v654_v43, %v653_v21 }
 0x2b8   :  { %v409_v49 = vmul.f32 1.442695, %v399_v40  ;;  %v407_v50 = vmul.f32 1.442695, %v398_v41  ;;  %v405_v51 = vmul.f32 1.442695, %v397_v42  ;;  %v403_v57 = vsub.f32 %v1526_v31, %v387_v45 }
 0x2b9   :  { %v684_v13 = vrot.slane %v683_v32, 4  ;;  %v413_v56 = vmul.f32 1.442695, %v401_v44  ;;  %v415_v62 = vmul.f32 1.442695, %v402_v53  ;;  %v648_v12 = vrot.slane %v647_v54, 1 }
 0x2ba   :  { %1244 = vpow2.f32 %v409_v49  ;;  %v411_v27 = vmul.f32 1.442695, %v400_v19  ;;  %v419_v63 = vmul.f32 1.442695, %v404_v14  ;;  %v656_v0 = vrot.slane %v655_v15, 1 }
 0x2bb   :  { %1246 = vpow2.f32 %v407_v50  ;;  %v671_v28 = vadd.f32 %v670_v61, %v669_v47  ;;  %v417_v2 = vmul.f32 1.442695, %v403_v57  ;;  %v685_v4 = vadd.f32 %v684_v13, %v683_v32 }
 0x2bc   :  { %1248 = vpow2.f32 %v405_v51  ;;  %v641_v31 = vadd.f32 %v640_v59, %v639_v24  ;;  %v649_v22 = vadd.f32 %v648_v12, %v647_v54  ;;  %v657_v23 = vadd.f32 %v656_v0, %v655_v15  ;;  %v733_v12 = vld [vmem:[%s2027_s5 + $0x18] sm:$0xff] }
 0x2bd   :  { %1250 = vpow2.f32 %v413_v56  ;;  %v672_v10 = vrot.slane %v671_v28, 1  ;;  %v686_v11 = vrot.slane %v685_v4, 2  ;;  %v679_v25 = vadd.f32 %v678_v8, %v677_v1 }
 0x2be   :  { %1252 = vpow2.f32 %v415_v62  ;;  %v707_v33 = vrot.slane %v705_v20, 1  ;;  %v694_v36 = vadd.f32 %v1600_v48, %v693_v29  ;;  %v708_v37 = vrot.slane %v705_v20, 2  ;;  %v730_v62 = vld [vmem:[%s2027_s5] sm:$0xff] }
 0x2bf   :  { %1254 = vpow2.f32 %v411_v27  ;;  %v687_v26 = vadd.f32 %v686_v11, %v685_v4  ;;  %v680_v32 = vrot.slane %v679_v25, 1  ;;  %v673_v34 = vadd.f32 %v672_v10, %v671_v28  ;;  %v731_v27 = vld [vmem:[%s2027_s5 + $0x8] sm:$0xff] }
 0x2c0   :  { %v1607_v6 = vpop.eup %1244  ;;  %1256 = vpow2.f32 %v419_v63  ;;  %v709_v24 = vrot.slane %v705_v20, 3  ;;  %v710_v40 = vrot.slane %v705_v20, 4  ;;  %v711_v41 = vrot.slane %v705_v20, 5  ;;  %v732_v63 = vld [vmem:[%s2027_s5 + $0x10] sm:$0xff] }
 0x2c1   :  { %v1609_v9 = vpop.eup %1246  ;;  %436 = vperm.xlu0 %1235, %v1607_v6   ;;  %1258 = vpow2.f32 %v417_v2  ;;  %v688_v35 = vrot.slane %v687_v26, 1  ;;  %v681_v39 = vadd.f32 %v680_v32, %v679_v25  ;;  %v696_v44 = vsel %vm695_vm4, %v1600_v48, %v694_v36 }
 0x2c2   :  { %v1615_v21 = vpop.eup %1248  ;;  %433 = vperm.xlu2 %1237, %v1609_v9   ;;  %v712_v45 = vrot.slane %v705_v20, 6  ;;  %v697_v49 = vmul.f32 %v696_v44, %v633_v3  ;;  %v698_v50 = vmul.f32 %v696_v44, %v641_v31  ;;  %v699_v51 = vmul.f32 %v696_v44, %v649_v22 }
 0x2c3   :  { %430 = vperm.xlu1 %1236, %v1615_v21   ;;  %v1622_v38 = vpop.eup %1250  ;;  %v689_v43 = vadd.f32 %v688_v35, %v687_v26  ;;  %v700_v52 = vmul.f32 %v696_v44, %v657_v23  ;;  %v701_v19 = vmul.f32 %v696_v44, %v665_v30  ;;  %v702_v14 = vmul.f32 %v696_v44, %v673_v34 }
 0x2c4   :  { %v1624_v42 = vpop.eup %1252  ;;  %v703_v54 = vmul.f32 %v696_v44, %v681_v39  ;;  %v722_v48 = vadd.f32 %v705_v20, %v697_v49  ;;  %v723_v13 = vadd.f32 %v707_v33, %v698_v50  ;;  %v724_v56 = vadd.f32 %v708_v37, %v699_v51  ;;  %v736_v49 = vld [vmem:[%s2027_s5 + $0x30] sm:$0xff]  ;;  %v737_v50 = vld [vmem:[%s2027_s5 + $0x38] sm:$0xff] }
 0x2c5   :  { %v1629_v47 = vpop.eup %1254  ;;  %v704_v15 = vmul.f32 %v696_v44, %v689_v43  ;;  %v725_v57 = vadd.f32 %v709_v24, %v700_v52  ;;  %v726_v58 = vadd.f32 %v710_v40, %v701_v19  ;;  %v727_v59 = vadd.f32 %v711_v41, %v702_v14  ;;  %v734_v40 = vld [vmem:[%s2027_s5 + $0x20] sm:$0xff] }
 0x2c6   :  { %v1631_v53 = vpop.eup %1256  ;;  %v728_v60 = vadd.f32 %v712_v45, %v703_v54  ;;  %v743_v0 = vperm.slane %v722_v48, 0  ;;  %v744_v28 = vperm.slane %v723_v13, 0  ;;  %v745_v1 = vperm.slane %v724_v56, 0 }
 0x2c7   :  { %2036 = vst [vmem:[#allocation5_spill] sm:$0xff] %v1631_v53  ;;  %v1634_v55 = vpop.eup %1258  ;;  %v729_v61 = vadd.f32 %v713_v46, %v704_v15  ;;  %v746_v2 = vperm.slane %v725_v57, 0  ;;  %v747_v3 = vperm.slane %v726_v58, 0  ;;  %v748_v4 = vperm.slane %v727_v59, 0  ;;  %v735_v46 = vld [vmem:[%s2027_s5 + $0x28] sm:$0xff] }
 0x2c8   :  { %2037 = vst [vmem:[#allocation6_spill] sm:$0xff] %v1634_v55  ;;  %v749_v5 = vperm.slane %v728_v60, 0  ;;  %v751_v7 = vmul.f32 %v743_v0, %v730_v62  ;;  %v752_v8 = vmul.f32 %v743_v0, %v731_v27  ;;  %v753_v10 = vmul.f32 %v743_v0, %v732_v63 }
 0x2c9   :  { %442 = vperm.xlu0 %1235, %v1622_v38   ;;  %v750_v31 = vperm.slane %v729_v61, 0  ;;  %v754_v11 = vmul.f32 %v743_v0, %v733_v12  ;;  %v755_v17 = vmul.f32 %v744_v28, %v730_v62  ;;  %v756_v20 = vmul.f32 %v744_v28, %v731_v27 }
 0x2ca   :  { %445 = vperm.xlu2 %1237, %v1624_v42   ;;  %v757_v22 = vmul.f32 %v744_v28, %v732_v63  ;;  %v758_v23 = vmul.f32 %v744_v28, %v733_v12  ;;  %v759_v25 = vmul.f32 %v745_v1, %v730_v62  ;;  %v760_v26 = vmul.f32 %v745_v1, %v731_v27 }
 0x2cb   :  { %439 = vperm.xlu1 %1236, %v1629_v47   ;;  %v761_v29 = vmul.f32 %v745_v1, %v732_v63  ;;  %v762_v30 = vmul.f32 %v745_v1, %v733_v12  ;;  %v763_v32 = vmul.f32 %v746_v2, %v730_v62  ;;  %v764_v33 = vmul.f32 %v746_v2, %v731_v27 }
 0x2cc   :  { %v765_v34 = vmul.f32 %v746_v2, %v732_v63  ;;  %v766_v35 = vmul.f32 %v746_v2, %v733_v12  ;;  %v767_v36 = vmul.f32 %v747_v3, %v730_v62  ;;  %v768_v37 = vmul.f32 %v747_v3, %v731_v27 }
 0x2cd   :  { %v769_v39 = vmul.f32 %v747_v3, %v732_v63  ;;  %v770_v24 = vmul.f32 %v747_v3, %v733_v12  ;;  %v771_v41 = vmul.f32 %v748_v4, %v730_v62  ;;  %v772_v43 = vmul.f32 %v748_v4, %v731_v27 }
 0x2ce   :  { %v773_v44 = vmul.f32 %v748_v4, %v732_v63  ;;  %v774_v45 = vmul.f32 %v748_v4, %v733_v12  ;;  %v775_v51 = vmul.f32 %v749_v5, %v730_v62  ;;  %v776_v52 = vmul.f32 %v749_v5, %v731_v27 }
 0x2cf   :  { %v777_v19 = vmul.f32 %v749_v5, %v732_v63  ;;  %v778_v14 = vmul.f32 %v749_v5, %v733_v12  ;;  %v779_v54 = vmul.f32 %v750_v31, %v730_v62  ;;  %v780_v15 = vmul.f32 %v750_v31, %v731_v27 }
 0x2d0   :  { %v781_v48 = vmul.f32 %v750_v31, %v732_v63  ;;  %v782_v13 = vmul.f32 %v750_v31, %v733_v12  ;;  %v1664_v56 = vadd.f32 %v751_v7, %v734_v40  ;;  %v1666_v57 = vadd.f32 %v752_v8, %v735_v46 }
 0x2d1   :  { %451 = vperm.xlu0 %1235, %v1631_v53   ;;  %v1668_v58 = vadd.f32 %v753_v10, %v736_v49  ;;  %v1670_v59 = vadd.f32 %v754_v11, %v737_v50  ;;  %v1672_v60 = vadd.f32 %v755_v17, %v734_v40  ;;  %v1674_v61 = vadd.f32 %v756_v20, %v735_v46 }
 0x2d2   :  { %v1676_v0 = vadd.f32 %v757_v22, %v736_v49  ;;  %v1678_v28 = vadd.f32 %v758_v23, %v737_v50  ;;  %v1680_v62 = vadd.f32 %v759_v25, %v734_v40  ;;  %v1682_v27 = vadd.f32 %v760_v26, %v735_v46 }
 0x2d3   :  { %448 = vperm.xlu1 %1236, %v1634_v55   ;;  %v1684_v63 = vadd.f32 %v761_v29, %v736_v49  ;;  %v1686_v12 = vadd.f32 %v762_v30, %v737_v50  ;;  %v1688_v1 = vadd.f32 %v763_v32, %v734_v40  ;;  %v1690_v2 = vadd.f32 %v764_v33, %v735_v46 }
 0x2d4   :  { %v1692_v3 = vadd.f32 %v765_v34, %v736_v49  ;;  %v1694_v4 = vadd.f32 %v766_v35, %v737_v50  ;;  %v1696_v5 = vadd.f32 %v767_v36, %v734_v40  ;;  %v1698_v31 = vadd.f32 %v768_v37, %v735_v46 }
 0x2d5   :  { %v1700_v7 = vadd.f32 %v769_v39, %v736_v49  ;;  %v1702_v8 = vadd.f32 %v770_v24, %v737_v50  ;;  %v1704_v10 = vadd.f32 %v771_v41, %v734_v40  ;;  %v1706_v11 = vadd.f32 %v772_v43, %v735_v46 }
 0x2d6   :  { %v1708_v17 = vadd.f32 %v773_v44, %v736_v49  ;;  %v1710_v20 = vadd.f32 %v774_v45, %v737_v50  ;;  %v1712_v22 = vadd.f32 %v775_v51, %v734_v40  ;;  %v1714_v23 = vadd.f32 %v776_v52, %v735_v46 }
 0x2d7   :  { %v1716_v25 = vadd.f32 %v777_v19, %v736_v49  ;;  %v1718_v26 = vadd.f32 %v778_v14, %v737_v50  ;;  %v1720_v29 = vadd.f32 %v779_v54, %v734_v40  ;;  %v1722_v30 = vadd.f32 %v780_v15, %v735_v46 }
 0x2d8   :  { %v1724_v32 = vadd.f32 %v781_v48, %v736_v49  ;;  %v1726_v33 = vadd.f32 %v782_v13, %v737_v50  ;;  %v815_v34 = vmax.f32 %v1664_v56, 0.0  ;;  %v816_v35 = vmax.f32 %v1666_v57, 0.0  ;;  %v738_v48 = vld [vmem:[%s2027_s5 + $0x40] sm:$0xff]  ;;  %v739_v13 = vld [vmem:[%s2027_s5 + $0x48] sm:$0xff] }
 0x2d9   :  { %v817_v36 = vmax.f32 %v1668_v58, 0.0  ;;  %v818_v37 = vmax.f32 %v1670_v59, 0.0  ;;  %v819_v39 = vmax.f32 %v1672_v60, 0.0  ;;  %v820_v24 = vmax.f32 %v1674_v61, 0.0  ;;  %v740_v60 = vld [vmem:[%s2027_s5 + $0x50] sm:$0xff]  ;;  %v741_v61 = vld [vmem:[%s2027_s5 + $0x58] sm:$0xff] }
 0x2da   :  { %v821_v40 = vmax.f32 %v1676_v0, 0.0  ;;  %v822_v41 = vmax.f32 %v1678_v28, 0.0  ;;  %v823_v43 = vmax.f32 %v1680_v62, 0.0  ;;  %v824_v44 = vmax.f32 %v1682_v27, 0.0 }
 0x2db   :  { %v825_v45 = vmax.f32 %v1684_v63, 0.0  ;;  %v826_v46 = vmax.f32 %v1686_v12, 0.0  ;;  %v827_v49 = vmax.f32 %v1688_v1, 0.0  ;;  %v828_v50 = vmax.f32 %v1690_v2, 0.0 }
 0x2dc   :  { %v829_v51 = vmax.f32 %v1692_v3, 0.0  ;;  %v830_v52 = vmax.f32 %v1694_v4, 0.0  ;;  %v831_v19 = vmax.f32 %v1696_v5, 0.0  ;;  %v832_v14 = vmax.f32 %v1698_v31, 0.0 }
 0x2dd   :  { %v833_v54 = vmax.f32 %v1700_v7, 0.0  ;;  %v834_v15 = vmax.f32 %v1702_v8, 0.0  ;;  %v835_v56 = vmax.f32 %v1704_v10, 0.0  ;;  %v836_v57 = vmax.f32 %v1706_v11, 0.0 }
 0x2de   :  { %v837_v58 = vmax.f32 %v1708_v17, 0.0  ;;  %v838_v59 = vmax.f32 %v1710_v20, 0.0  ;;  %v839_v0 = vmax.f32 %v1712_v22, 0.0  ;;  %v840_v28 = vmax.f32 %v1714_v23, 0.0 }
 0x2df   :  { %v841_v62 = vmax.f32 %v1716_v25, 0.0  ;;  %v842_v27 = vmax.f32 %v1718_v26, 0.0  ;;  %v843_v63 = vmax.f32 %v1720_v29, 0.0  ;;  %v844_v12 = vmax.f32 %v1722_v30, 0.0 }
 0x2e0   :  { %v845_v1 = vmax.f32 %v1724_v32, 0.0  ;;  %v846_v2 = vmax.f32 %v1726_v33, 0.0  ;;  %v847_v3 = vmul.f32 %v815_v34, %v738_v48  ;;  %v848_v4 = vmul.f32 %v816_v35, %v739_v13 }
 0x2e1   :  { %v849_v5 = vmul.f32 %v817_v36, %v740_v60  ;;  %v850_v31 = vmul.f32 %v818_v37, %v741_v61  ;;  %v851_v7 = vmul.f32 %v819_v39, %v738_v48  ;;  %v852_v8 = vmul.f32 %v820_v24, %v739_v13 }
 0x2e2   :  { %v853_v10 = vmul.f32 %v821_v40, %v740_v60  ;;  %v854_v11 = vmul.f32 %v822_v41, %v741_v61  ;;  %v855_v17 = vmul.f32 %v823_v43, %v738_v48  ;;  %v856_v20 = vmul.f32 %v824_v44, %v739_v13 }
 0x2e3   :  { %v857_v22 = vmul.f32 %v825_v45, %v740_v60  ;;  %v858_v23 = vmul.f32 %v826_v46, %v741_v61  ;;  %v859_v25 = vmul.f32 %v827_v49, %v738_v48  ;;  %v860_v26 = vmul.f32 %v828_v50, %v739_v13 }
 0x2e4   :  { %v861_v29 = vmul.f32 %v829_v51, %v740_v60  ;;  %v862_v30 = vmul.f32 %v830_v52, %v741_v61  ;;  %v863_v53 = vmul.f32 %v831_v19, %v738_v48  ;;  %v864_v32 = vmul.f32 %v832_v14, %v739_v13 }
 0x2e5   :  { %v865_v55 = vmul.f32 %v833_v54, %v740_v60  ;;  %v866_v33 = vmul.f32 %v834_v15, %v741_v61  ;;  %v867_v34 = vmul.f32 %v835_v56, %v738_v48  ;;  %v868_v35 = vmul.f32 %v836_v57, %v739_v13 }
 0x2e6   :  { %v869_v36 = vmul.f32 %v837_v58, %v740_v60  ;;  %v870_v37 = vmul.f32 %v838_v59, %v741_v61  ;;  %v871_v39 = vmul.f32 %v839_v0, %v738_v48  ;;  %v872_v24 = vmul.f32 %v840_v28, %v739_v13 }
 0x2e7   :  { %v873_v40 = vmul.f32 %v841_v62, %v740_v60  ;;  %v874_v41 = vmul.f32 %v842_v27, %v741_v61  ;;  %v875_v43 = vmul.f32 %v843_v63, %v738_v48  ;;  %v876_v44 = vmul.f32 %v844_v12, %v739_v13 }
 0x2e8   :  { %v877_v45 = vmul.f32 %v845_v1, %v740_v60  ;;  %v878_v46 = vmul.f32 %v846_v2, %v741_v61  ;;  %v879_v49 = vadd.f32 %v848_v4, %v847_v3  ;;  %v888_v50 = vadd.f32 %v852_v8, %v851_v7 }
 0x2e9   :  { %v897_v51 = vadd.f32 %v856_v20, %v855_v17  ;;  %v906_v52 = vadd.f32 %v860_v26, %v859_v25  ;;  %v915_v19 = vadd.f32 %v864_v32, %v863_v53  ;;  %v924_v14 = vadd.f32 %v868_v35, %v867_v34 }
 0x2ea   :  { %v933_v54 = vadd.f32 %v872_v24, %v871_v39  ;;  %v942_v15 = vadd.f32 %v876_v44, %v875_v43  ;;  %v880_v56 = vadd.f32 %v879_v49, %v849_v5  ;;  %v889_v57 = vadd.f32 %v888_v50, %v853_v10 }
 0x2eb   :  { %v898_v58 = vadd.f32 %v897_v51, %v857_v22  ;;  %v907_v59 = vadd.f32 %v906_v52, %v861_v29  ;;  %v916_v0 = vadd.f32 %v915_v19, %v865_v55  ;;  %v925_v28 = vadd.f32 %v924_v14, %v869_v36  ;;  %v1241_v19 = vld [vmem:[%s2027_s5 + $0x60] ss:$0 sm:$0xff] }
 0x2ec   :  { %v934_v62 = vadd.f32 %v933_v54, %v873_v40  ;;  %v943_v27 = vadd.f32 %v942_v15, %v877_v45  ;;  %v881_v48 = vadd.f32 %v880_v56, %v850_v31  ;;  %v890_v13 = vadd.f32 %v889_v57, %v854_v11 }
 0x2ed   :  { %v899_v60 = vadd.f32 %v898_v58, %v858_v23  ;;  %v908_v61 = vadd.f32 %v907_v59, %v862_v30  ;;  %v917_v63 = vadd.f32 %v916_v0, %v866_v33  ;;  %v926_v12 = vadd.f32 %v925_v28, %v870_v37 }
 0x2ee   :  { %v935_v1 = vadd.f32 %v934_v62, %v874_v41  ;;  %v944_v2 = vadd.f32 %v943_v27, %v878_v46  ;;  %v882_v53 = vrot.slane %v881_v48, 4  ;;  %v891_v3 = vrot.slane %v890_v13, 4 }
 0x2ef   :  { %v900_v4 = vrot.slane %v899_v60, 4  ;;  %v909_v7 = vrot.slane %v908_v61, 4  ;;  %v918_v5 = vrot.slane %v917_v63, 4  ;;  %v927_v8 = vrot.slane %v926_v12, 4 }
 0x2f0   :  { %v936_v10 = vrot.slane %v935_v1, 4  ;;  %v945_v17 = vrot.slane %v944_v2, 4  ;;  %v883_v55 = vadd.f32 %v882_v53, %v881_v48  ;;  %v892_v20 = vadd.f32 %v891_v3, %v890_v13 }
 0x2f1   :  { %v901_v22 = vadd.f32 %v900_v4, %v899_v60  ;;  %v910_v25 = vadd.f32 %v909_v7, %v908_v61  ;;  %v919_v31 = vadd.f32 %v918_v5, %v917_v63  ;;  %v928_v11 = vadd.f32 %v927_v8, %v926_v12 }
 0x2f2   :  { %v937_v23 = vadd.f32 %v936_v10, %v935_v1  ;;  %v946_v26 = vadd.f32 %v945_v17, %v944_v2  ;;  %v884_v29 = vrot.slane %v883_v55, 2  ;;  %v893_v30 = vrot.slane %v892_v20, 2 }
 0x2f3   :  { %v902_v32 = vrot.slane %v901_v22, 2  ;;  %v911_v33 = vrot.slane %v910_v25, 2  ;;  %v920_v34 = vrot.slane %v919_v31, 2  ;;  %v929_v35 = vrot.slane %v928_v11, 2 }
 0x2f4   :  { %v938_v36 = vrot.slane %v937_v23, 2  ;;  %v947_v37 = vrot.slane %v946_v26, 2  ;;  %v885_v39 = vadd.f32 %v884_v29, %v883_v55  ;;  %v894_v24 = vadd.f32 %v893_v30, %v892_v20 }
 0x2f5   :  { %v903_v40 = vadd.f32 %v902_v32, %v901_v22  ;;  %v912_v41 = vadd.f32 %v911_v33, %v910_v25  ;;  %v921_v43 = vadd.f32 %v920_v34, %v919_v31  ;;  %v930_v44 = vadd.f32 %v929_v35, %v928_v11 }
 0x2f6   :  { %v939_v45 = vadd.f32 %v938_v36, %v937_v23  ;;  %v948_v46 = vadd.f32 %v947_v37, %v946_v26  ;;  %v886_v49 = vrot.slane %v885_v39, 1  ;;  %v895_v50 = vrot.slane %v894_v24, 1 }
 0x2f7   :  { %v904_v51 = vrot.slane %v903_v40, 1  ;;  %v913_v52 = vrot.slane %v912_v41, 1  ;;  %v922_v14 = vrot.slane %v921_v43, 1  ;;  %v931_v54 = vrot.slane %v930_v44, 1 }
 0x2f8   :  { %v940_v15 = vrot.slane %v939_v45, 1  ;;  %v949_v56 = vrot.slane %v948_v46, 1  ;;  %v887_v57 = vadd.f32 %v886_v49, %v885_v39  ;;  %v896_v58 = vadd.f32 %v895_v50, %v894_v24 }
 0x2f9   :  { %v905_v59 = vadd.f32 %v904_v51, %v903_v40  ;;  %v914_v0 = vadd.f32 %v913_v52, %v912_v41  ;;  %v923_v28 = vadd.f32 %v922_v14, %v921_v43  ;;  %v932_v62 = vadd.f32 %v931_v54, %v930_v44 }
 0x2fa   :  { %v941_v27 = vadd.f32 %v940_v15, %v939_v45  ;;  %v950_v48 = vadd.f32 %v949_v56, %v948_v46  ;;  %v952_v13 = vadd.f32 %v1241_v19, %v887_v57  ;;  %v953_v60 = vadd.f32 %v1241_v19, %v896_v58 }
 0x2fb   :  { %v954_v61 = vadd.f32 %v1241_v19, %v905_v59  ;;  %v955_v63 = vadd.f32 %v1241_v19, %v914_v0  ;;  %v956_v12 = vadd.f32 %v1241_v19, %v923_v28  ;;  %v957_v1 = vadd.f32 %v1241_v19, %v932_v62 }
 0x2fc   :  { %v958_v2 = vadd.f32 %v1241_v19, %v941_v27  ;;  %v969_v53 = vrot.slane %v953_v60, 7  ;;  %v1031_v56 = vstv %s993_s3  ;;  %v1037_v59 = vstv %s1209_s0 }
 0x2fd   :  { %1029 = vadd.xlane.f32.xlu1 %v1594_v16  ;;  %v959_v16 = vadd.f32 %v1241_v19, %v950_v48  ;;  %v971_v3 = vrot.slane %v954_v61, 6  ;;  %v973_v4 = vrot.slane %v955_v63, 5  ;;  %v975_v7 = vrot.slane %v956_v12, 4 }
 0x2fe   :  { %v970_v5 = vsel %vm195_vm10, %v969_v53, %v952_v13  ;;  %v977_v8 = vrot.slane %v957_v1, 3  ;;  %v979_v17 = vrot.slane %v958_v2, 2  ;;  %v1051_v0 = vstv %s1213_s4 }
 0x2ff   :  { %v972_v10 = vsel %vm198_vm11, %v971_v3, %v970_v5  ;;  %v981_v20 = vrot.slane %v959_v16, 1  ;;  %v1065_v28 = vstv %s1217_s1  ;;  %v1034_v62 = vstv %s1208_s12 }
 0x300   :  { %v974_v55 = vsel %vm201_vm13, %v973_v4, %v972_v10  ;;  %v1048_v27 = vstv %s1212_s13  ;;  %v1062_v48 = vstv %s1216_s14 }
 0x301   :  { %v976_v22 = vsel %vm2035_vm14, %v975_v7, %v974_v55  ;;  %v1045_v55 = vstv %s1809_s16 }
 0x302   :  { %v978_v25 = vsel %vm2034_vm15, %v977_v8, %v976_v22 }
 0x303   :  { %v980_v31 = vsel %vm2033_vm0, %v979_v17, %v978_v25  ;;  %v1041_v17 = vstv %s1807_s15 }
 0x304   :  { %v982_v11 = vsel %vm2032_vm1, %v981_v20, %v980_v31 }
 0x305   :  { %v990_v23 = vsel %vm989_vm7, %v982_v11, 0.0  ;;  %1174 = vst [vmem:[%s2029_s7 + $0x8] sm:$0xff] %v982_v11  ;;  %v984_v15 = vsel %vm960_vm8, %v982_v11, 0.0  ;;  %v1055_v11 = vstv %s1813_s17 }
 0x306   :  { %991 = vadd.xlane.f32.xlu0 %v990_v23  ;;  %v1059_v23 = vstv %s1815_s18 }
 0x31c   :  { %v434_v30 = vpop.permute.xlu2 %433 }
 0x31d   :  { %v454_v33 = vperm.slane %v434_v30, %v1394_v18  ;;  %v1069_v30 = vstv %s1819_s19 }
 0x324   :  { %v446_v43 = vpop.permute.xlu2 %445 }
 0x325   :  { %v458_v46 = vperm.slane %v446_v43, %v1394_v18 }
 0x333   :  { %v437_v26 = vpop.permute.xlu0 %436 }
 0x334   :  { %v455_v35 = vperm.slane %v437_v26, %v1394_v18 }
 0x335   :  { %v431_v29 = vpop.permute.xlu1 %430 }
 0x336   :  { %v453_v32 = vperm.slane %v431_v29, %v1394_v18 }
 0x338   :  { %v461_v36 = vsel %vm195_vm10, %v454_v33, %v453_v32  ;;  %v1073_v32 = vstv %s1825_s20 }
 0x339   :  { %v462_v40 = vsel %vm198_vm11, %v455_v35, %v461_v36 }
 0x33b   :  { %v443_v34 = vpop.permute.xlu0 %442 }
 0x33c   :  { %v457_v24 = vperm.slane %v443_v34, %v1394_v18 }
 0x33d   :  { %v440_v37 = vpop.permute.xlu1 %439 }
 0x33e   :  { %v456_v39 = vperm.slane %v440_v37, %v1394_v18 }
 0x340   :  { %v463_v41 = vsel %vm201_vm13, %v456_v39, %v462_v40 }
 0x341   :  { %v464_v45 = vsel %vm2035_vm14, %v457_v24, %v463_v41 }
 0x342   :  { %v465_v52 = vsel %vm2034_vm15, %v458_v46, %v464_v45 }
 0x343   :  { %v452_v44 = vpop.permute.xlu0 %451 }
 0x344   :  { %v460_v49 = vperm.slane %v452_v44, %v1394_v18 }
 0x345   :  { %v449_v50 = vpop.permute.xlu1 %448 }
 0x346   :  { %v459_v51 = vperm.slane %v449_v50, %v1394_v18 }
 0x348   :  { %v466_v19 = vsel %vm2033_vm0, %v459_v51, %v465_v52 }
 0x349   :  { %v467_v14 = vsel %vm2032_vm1, %v460_v49, %v466_v19 }
 0x34a   :  { %v469_v54 = vsel %vm376_vm2, %v467_v14, 0.0 }
 0x34b   :  { %470 = vadd.xlane.f32.xlu2 %v469_v54 }
 0x353   :  { %985 = vadd.xlane.f32.xlu2 %v984_v15 }
 0x370   :  { %v1030_v57 = vpop.xlane.xlu1 %1029 }
 0x371   :  { %v1805_v58 = vadd.f32 %v1031_v56, %v1030_v57 }
 0x373   :  { %v1038_v60 = vmul.f32 %v1037_v59, %v1805_v58  ;;  %v1052_v61 = vmul.f32 %v1051_v0, %v1805_v58  ;;  %v1066_v63 = vmul.f32 %v1065_v28, %v1805_v58 }
 0x379   :  { %v1811_v13 = vpop.xlane.xlu0 %991 }
 0x37a   :  { %v1035_v12 = vmul.f32 %v1034_v62, %v1811_v13  ;;  %v1049_v1 = vmul.f32 %v1048_v27, %v1811_v13  ;;  %v1063_v2 = vmul.f32 %v1062_v48, %v1811_v13 }
 0x37c   :  { %v1039_v7 = vadd.f32 %v1038_v60, %v1035_v12  ;;  %v1053_v5 = vadd.f32 %v1052_v61, %v1049_v1  ;;  %v1067_v8 = vadd.f32 %v1066_v63, %v1063_v2 }
 0x3be   :  { %v471_v16 = vpop.xlane.xlu2 %470 }
 0x3bf   :  { %v1827_v53 = vperm.slane %v471_v16, 0  ;;  %v1829_v3 = vperm.slane %v471_v16, 1  ;;  %v1831_v4 = vperm.slane %v471_v16, 2  ;;  %v1833_v10 = vperm.slane %v471_v16, 3 }
 0x3c0   :  { %v1838_v20 = vperm.slane %v471_v16, 5  ;;  %v1843_v31 = vperm.slane %v471_v16, 4  ;;  %v1848_v26 = vperm.slane %v471_v16, 6  ;;  %v1850_v29 = vperm.slane %v471_v16, 7 }
 0x3c1   :  { %1260 = vrcp.f32 %v1827_v53  ;;  %v530_v22 = vand.u32 2147483648, %v1831_v4  ;;  %v515_v25 = vand.u32 2147483648, %v1829_v3  ;;  %v528_v33 = vand.u32 2147483647, %v1831_v4 }
 0x3c2   :  { %1262 = vrcp.f32 %v1829_v3  ;;  %v513_v34 = vand.u32 2147483647, %v1829_v3  ;;  %v498_v35 = vand.u32 2147483647, %v1827_v53  ;;  %vm494_vm9 = vweird.f32 %v1827_v53 }
 0x3c3   :  { %1264 = vrcp.f32 %v1831_v4  ;;  %v1861_v37 = vor.u32 1.1754944e-38, %v530_v22  ;;  %v1863_v39 = vor.u32 1.1754944e-38, %v515_v25  ;;  %vm509_vm12 = vweird.f32 %v1829_v3 }
 0x3c4   :  { %1266 = vrcp.f32 %v1833_v10  ;;  %vm524_vm2 = vweird.f32 %v1831_v4  ;;  %v500_v46 = vand.u32 2147483648, %v1827_v53  ;;  %v573_v49 = vand.u32 2147483647, %v1838_v20 }
 0x3c5   :  { %1268 = vrcp.f32 %v1838_v20  ;;  %vm1880_vm3 = vcmp.eq.f32.partialorder %v513_v34, 8.507059e+37  ;;  %vm1884_vm4 = vcmp.eq.f32.partialorder %v498_v35, 8.507059e+37  ;;  %vm1890_vm5 = vcmp.eq.f32.partialorder %v528_v33, 8.507059e+37 }
 0x3c6   :  { %v1859_v36 = vpop.xlane.xlu2 %985  ;;  %1270 = vrcp.f32 %v1843_v31  ;;  %v575_v0 = vand.u32 2147483648, %v1838_v20  ;;  %v501_v12 = vor.u32 1.1754944e-38, %v500_v46  ;;  %vm569_vm8 = vweird.f32 %v1838_v20 }
 0x3c7   :  { %v1866_v24 = vpop.eup %1260  ;;  %v1042_v40 = vmul.f32 %v1041_v17, %v1859_v36  ;;  %v1056_v41 = vmul.f32 %v1055_v11, %v1859_v36  ;;  %v1070_v43 = vmul.f32 %v1069_v30, %v1859_v36  ;;  %1272 = vrcp.f32 %v1848_v26 }
 0x3c8   :  { %v1263_v44 = vpop.eup %1262  ;;  %v490_v45 = vmul.f32 %v1866_v24, %v1827_v53  ;;  %1274 = vrcp.f32 %v1850_v29  ;;  %vm495_vm6 = vweird.f32 %v1866_v24  ;;  %v545_v53 = vand.u32 2147483648, %v1833_v10 }
 0x3c9   :  { %v1265_v50 = vpop.eup %1264  ;;  %v1043_v51 = vadd.f32 %v1042_v40, %v1039_v7  ;;  %v1057_v52 = vadd.f32 %v1056_v41, %v1053_v5  ;;  %v1071_v19 = vadd.f32 %v1070_v43, %v1067_v8  ;;  %v505_v14 = vmul.f32 %v1263_v44, %v1829_v3  ;;  %vm1912_vm0 = vmor %vm494_vm9, %vm495_vm6 }
 0x3ca   :  { %v520_v56 = vmul.f32 %v1265_v50, %v1831_v4  ;;  %v491_v59 = vsub.f32 1.0, %v490_v45  ;;  %v1895_v28 = vpop.eup %1266  ;;  %vm510_vm7 = vweird.f32 %v1263_v44  ;;  %vm525_vm1 = vweird.f32 %v1265_v50 }
 0x3cb   :  { %v1046_v62 = vadd.f32 %v1045_v55, %v1043_v51  ;;  %v1060_v27 = vadd.f32 %v1059_v23, %v1057_v52  ;;  %v506_v48 = vsub.f32 1.0, %v505_v14  ;;  %v1269_v60 = vpop.eup %1268  ;;  %v1074_v2 = vadd.f32 %v1073_v32, %v1071_v19  ;;  %vm511_vm14 = vmor %vm509_vm12, %vm510_vm7 }
 0x3cc   :  { %v521_v61 = vsub.f32 1.0, %v520_v56  ;;  %v492_v63 = vmul.f32 %v1866_v24, %v491_v59  ;;  %v1900_v1 = vpop.eup %1270  ;;  %v565_v5 = vmul.f32 %v1269_v60, %v1838_v20  ;;  %v535_v22 = vmul.f32 %v1895_v28, %v1833_v10  ;;  %vm526_vm9 = vmor %vm524_vm2, %vm525_vm1 }
 0x3cd   :  { %v1075_v16 = vmax.f32 %v1046_v62, %v1060_v27  ;;  %v507_v7 = vmul.f32 %v1263_v44, %v506_v48  ;;  %v1903_v8 = vpop.eup %1272  ;;  %vm570_vm15 = vweird.f32 %v1269_v60  ;;  %vm539_vm1 = vweird.f32 %v1833_v10 }
 0x3ce   :  { %v522_v17 = vmul.f32 %v1265_v50, %v521_v61  ;;  %v493_v55 = vadd.f32 %v1866_v24, %v492_v63  ;;  %v566_v30 = vsub.f32 1.0, %v565_v5  ;;  %v1916_v32 = vpop.eup %1274  ;;  %v536_v35 = vsub.f32 1.0, %v535_v22 }
 0x3cf   :  { %v1076_v25 = vmax.f32 %v1075_v16, %v1074_v2  ;;  %v508_v11 = vadd.f32 %v1263_v44, %v507_v7  ;;  %vm585_vm6 = vweird.f32 %v1903_v8  ;;  %v595_v7 = vmul.f32 %v1916_v32, %v1850_v29 }
 0x3d0   :  { %v523_v33 = vadd.f32 %v1265_v50, %v522_v17  ;;  %v497_v34 = vsel %vm1912_vm0, %v1866_v24, %v493_v55  ;;  %v567_v24 = vmul.f32 %v1269_v60, %v566_v30  ;;  %v537_v54 = vmul.f32 %v1895_v28, %v536_v35 }
 0x3d1   :  { %v1077_v40 = vsub.f32 %v1046_v62, %v1076_v25  ;;  %v1080_v41 = vsub.f32 %v1060_v27, %v1076_v25  ;;  %v1083_v43 = vsub.f32 %v1074_v2, %v1076_v25  ;;  %v512_v45 = vsel %vm511_vm14, %v1263_v44, %v508_v11  ;;  %vm1942_vm14 = vmor %vm569_vm8, %vm570_vm15 }
 0x3d2   :  { %v527_v46 = vsel %vm526_vm9, %v1265_v50, %v523_v33  ;;  %v517_v3 = vsel %vm1880_vm3, %v1863_v39, %v512_v45  ;;  %v502_v51 = vsel %vm1884_vm4, %v501_v12, %v497_v34  ;;  %v568_v59 = vadd.f32 %v1269_v60, %v567_v24  ;;  %v2048_v45 = vld [vmem:[#allocation6_spill] sm:$0xff] }
 0x3d3   :  { %v1078_v52 = vmul.f32 1.442695, %v1077_v40  ;;  %v1081_v19 = vmul.f32 1.442695, %v1080_v41  ;;  %v1084_v14 = vmul.f32 1.442695, %v1083_v43  ;;  %v532_v56 = vsel %vm1890_vm5, %v1861_v37, %v527_v46 }
 0x3d4   :  { %v533_v4 = vmul.f32 %v1607_v6, %v532_v56  ;;  %v518_v44 = vmul.f32 %v1609_v9, %v517_v3  ;;  %v503_v50 = vmul.f32 %v1615_v21, %v502_v51  ;;  %vm540_vm0 = vweird.f32 %v1895_v28 }
 0x3d5   :  { %1276 = vpow2.f32 %v1078_v52  ;;  %v543_v37 = vand.u32 2147483647, %v1833_v10  ;;  %v572_v6 = vsel %vm1942_vm14, %v1269_v60, %v568_v59  ;;  %v576_v9 = vor.u32 1.1754944e-38, %v575_v0  ;;  %vm541_vm12 = vmor %vm539_vm1, %vm540_vm0  ;;  %v2049_v52 = vld [vmem:[#allocation5_spill] sm:$0xff] }
 0x3d6   :  { %1278 = vpow2.f32 %v1081_v19  ;;  %1138 = vperm.xlu2 %1237, %v533_v4   ;;  %1135 = vperm.xlu0 %1235, %v518_v44   ;;  %v550_v21 = vmul.f32 %v1900_v1, %v1843_v31  ;;  %vm574_vm15 = vcmp.eq.f32.partialorder %v573_v49, 8.507059e+37  ;;  %v538_v15 = vadd.f32 %v1895_v28, %v537_v54 }
 0x3d7   :  { %1132 = vperm.xlu1 %1236, %v503_v50   ;;  %1280 = vpow2.f32 %v1084_v14  ;;  %v577_v57 = vsel %vm574_vm15, %v576_v9, %v572_v6  ;;  %v546_v62 = vor.u32 1.1754944e-38, %v545_v53  ;;  %vm544_vm2 = vcmp.eq.f32.partialorder %v543_v37, 8.507059e+37 }
 0x3d8   :  { %v551_v27 = vsub.f32 1.0, %v550_v21  ;;  %v542_v48 = vsel %vm541_vm12, %v1895_v28, %v538_v15  ;;  %v560_v0 = vand.u32 2147483648, %v1843_v31  ;;  %v580_v60 = vmul.f32 %v1903_v8, %v1848_v26 }
 0x3d9   :  { %v547_v61 = vsel %vm544_vm2, %v546_v62, %v542_v48  ;;  %vm555_vm3 = vweird.f32 %v1900_v1  ;;  %v558_v10 = vand.u32 2147483647, %v1843_v31  ;;  %v578_v63 = vmul.f32 %v1624_v42, %v577_v57 }
 0x3da   :  { %v552_v20 = vmul.f32 %v1900_v1, %v551_v27  ;;  %vm554_vm4 = vweird.f32 %v1843_v31  ;;  %v581_v28 = vsub.f32 1.0, %v580_v60  ;;  %vm584_vm5 = vweird.f32 %v1848_v26 }
 0x3db   :  { %v1964_v49 = vpop.eup %1276  ;;  %v548_v2 = vmul.f32 %v1629_v47, %v547_v61  ;;  %vm556_vm7 = vmor %vm554_vm4, %vm555_vm3  ;;  %v561_v17 = vor.u32 1.1754944e-38, %v560_v0  ;;  %v590_v31 = vand.u32 2147483648, %v1848_v26  ;;  %vm559_vm8 = vcmp.eq.f32.partialorder %v558_v10, 8.507059e+37 }
 0x3dc   :  { %v1279_v12 = vpop.eup %1278  ;;  %v553_v16 = vadd.f32 %v1900_v1, %v552_v20  ;;  %v582_v42 = vmul.f32 %v1903_v8, %v581_v28  ;;  %v588_v22 = vand.u32 2147483647, %v1848_v26  ;;  %v596_v25 = vsub.f32 1.0, %v595_v7  ;;  %vm586_vm14 = vmor %vm584_vm5, %vm585_vm6 }
 0x3dd   :  { %v1086_v5 = vadd.f32 %v1279_v12, %v1964_v49  ;;  %v1281_v55 = vpop.eup %1280  ;;  %v605_v33 = vand.u32 2147483648, %v1850_v29  ;;  %vm600_vm9 = vweird.f32 %v1916_v32  ;;  %v603_v53 = vand.u32 2147483647, %v1850_v29 }
 0x3de   :  { %1147 = vperm.xlu2 %1237, %v578_v63   ;;  %1141 = vperm.xlu0 %1235, %v548_v2   ;;  %v557_v47 = vsel %vm556_vm7, %v1900_v1, %v553_v16  ;;  %v583_v30 = vadd.f32 %v1903_v8, %v582_v42  ;;  %v597_v35 = vmul.f32 %v1916_v32, %v596_v25  ;;  %v591_v1 = vor.u32 1.1754944e-38, %v590_v31 }
 0x3df   :  { %v1087_v11 = vadd.f32 %v1281_v55, %v1086_v5  ;;  %v562_v23 = vsel %vm559_vm8, %v561_v17, %v557_v47  ;;  %vm589_vm0 = vcmp.eq.f32.partialorder %v588_v22, 8.507059e+37  ;;  %vm599_vm15 = vweird.f32 %v1850_v29 }
 0x3e0   :  { %v563_v34 = vmul.f32 %v1622_v38, %v562_v23  ;;  %v587_v40 = vsel %vm586_vm14, %v1903_v8, %v583_v30  ;;  %v598_v41 = vadd.f32 %v1916_v32, %v597_v35  ;;  %vm601_vm1 = vmor %vm599_vm15, %vm600_vm9  ;;  %v606_v43 = vor.u32 1.1754944e-38, %v605_v33 }
 0x3e1   :  { %1282 = vrcp.f32 %v1087_v11  ;;  %v592_v38 = vsel %vm589_vm0, %v591_v1, %v587_v40  ;;  %vm604_vm12 = vcmp.eq.f32.partialorder %v603_v53, 8.507059e+37  ;;  %v1099_v14 = vand.u32 2147483648, %v1087_v11 }
 0x3e2   :  { %1144 = vperm.xlu1 %1236, %v563_v34   ;;  %v593_v46 = vmul.f32 %v2048_v45, %v592_v38  ;;  %v602_v3 = vsel %vm601_vm1, %v1916_v32, %v598_v41  ;;  %v1097_v29 = vand.u32 2147483647, %v1087_v11  ;;  %vm1093_vm3 = vweird.f32 %v1087_v11 }
 0x3e3   :  { %v607_v51 = vsel %vm604_vm12, %v606_v43, %v602_v3  ;;  %v1100_v44 = vor.u32 1.1754944e-38, %v1099_v14  ;;  %v1110_v15 = vstv %s1206_s21  ;;  %v1112_v62 = vstv %s1207_s22 }
 0x3e4   :  { %v608_v19 = vmul.f32 %v2049_v52, %v607_v51  ;;  %vm1098_vm5 = vcmp.eq.f32.partialorder %v1097_v29, 8.507059e+37  ;;  %vm1115_vm6 = vcmask 7168   ;;  %vm1117_vm7 = vcmask 72768  }
 0x3e5   :  { %vm1119_vm8 = vcmask 80968   ;;  %vm1121_vm9 = vcmask 89168   ;;  %vm2050_vm14 = vcmask 1044484   ;;  %vm2051_vm0 = vcmask 1045509  }
 0x3e6   :  { %1150 = vperm.xlu0 %1235, %v593_v46   ;;  %vm2052_vm15 = vcmask 1046534   ;;  %vm2053_vm1 = vcmask 1047559  }
 0x3e7   :  { %v1283_v26 = vpop.eup %1282 }
 0x3e8   :  { %v1089_v24 = vmul.f32 %v1283_v26, %v1087_v11  ;;  %vm1094_vm2 = vweird.f32 %v1283_v26 }
 0x3e9   :  { %vm1095_vm4 = vmor %vm1093_vm3, %vm1094_vm2 }
 0x3ea   :  { %v1090_v8 = vsub.f32 1.0, %v1089_v24  ;;  %1153 = vperm.xlu1 %1236, %v608_v19  }
 0x3ec   :  { %v1091_v56 = vmul.f32 %v1283_v26, %v1090_v8 }
 0x3ee   :  { %v1092_v4 = vadd.f32 %v1283_v26, %v1091_v56 }
 0x3f0   :  { %v1096_v50 = vsel %vm1095_vm4, %v1283_v26, %v1092_v4 }
 0x3f1   :  { %v1101_v32 = vsel %vm1098_vm5, %v1100_v44, %v1096_v50 }
 0x3f2   :  { %v1102_v59 = vmul.f32 %v1964_v49, %v1101_v32  ;;  %v1103_v39 = vmul.f32 %v1279_v12, %v1101_v32  ;;  %v1104_v54 = vmul.f32 %v1281_v55, %v1101_v32 }
 0x3f4   :  { %v1105_v37 = vmul.f32 %v1102_v59, %v1811_v13  ;;  %v1106_v6 = vmul.f32 %v1103_v39, %v1805_v58  ;;  %v1108_v21 = vmul.f32 %v1104_v54, %v1859_v36  ;;  %v1155_v36 = vadd.s32 4294967280, %v1394_v18 }
 0x3f6   :  { %v1107_v9 = vadd.f32 %v1106_v6, %v1105_v37 }
 0x3f8   :  { %v1109_v57 = vadd.f32 %v1108_v21, %v1107_v9 }
 0x3fa   :  { %v1111_v27 = vmul.f32 %v1110_v15, %v1109_v57 }
 0x3fc   :  { %v1113_v48 = vadd.f32 %v1112_v62, %v1111_v27 }
 0x3fe   :  { %1116 = vst.msk [vmem:[%s2029_s7] sm:$0xff] %vm1115_vm6, %v1113_v48 }
 0x3ff   :  { %1118 = vst.msk [vmem:[%s2029_s7] sm:$0xff] %vm1117_vm7, %v1102_v59 }
 0x400   :  { %1120 = vst.msk [vmem:[%s2029_s7] sm:$0xff] %vm1119_vm8, %v1103_v39 }
 0x401   :  { %1122 = vst.msk [vmem:[%s2029_s7] sm:$0xff] %vm1121_vm9, %v1104_v54 }
 0x430   :  { %v1139_v0 = vpop.permute.xlu2 %1138 }
 0x431   :  { %v1158_v63 = vperm.slane %v1139_v0, %v1155_v36 }
 0x438   :  { %v1148_v7 = vpop.permute.xlu2 %1147 }
 0x439   :  { %v1161_v42 = vperm.slane %v1148_v7, %v1155_v36 }
 0x448   :  { %v1136_v58 = vpop.permute.xlu0 %1135 }
 0x449   :  { %v1133_v13 = vpop.permute.xlu1 %1132  ;;  %v1157_v60 = vperm.slane %v1136_v58, %v1155_v36 }
 0x44a   :  { %v1156_v61 = vperm.slane %v1133_v13, %v1155_v36 }
 0x44c   :  { %v1164_v10 = vsel %vm195_vm10, %v1157_v60, %v1156_v61  ;;  %vm1172_vm10 = vcmask 195712  }
 0x44d   :  { %v1165_v28 = vsel %vm198_vm11, %v1158_v63, %v1164_v10 }
 0x450   :  { %v1142_v20 = vpop.permute.xlu0 %1141 }
 0x451   :  { %v1159_v49 = vperm.slane %v1142_v20, %v1155_v36 }
 0x453   :  { %v1166_v2 = vsel %vm201_vm13, %v1159_v49, %v1165_v28 }
 0x454   :  { %v1145_v12 = vpop.permute.xlu1 %1144 }
 0x455   :  { %v1160_v16 = vperm.slane %v1145_v12, %v1155_v36 }
 0x457   :  { %v1167_v5 = vsel %vm2050_vm14, %v1160_v16, %v1166_v2 }
 0x458   :  { %v1151_v17 = vpop.permute.xlu0 %1150  ;;  %v1168_v31 = vsel %vm2051_vm0, %v1161_v42, %v1167_v5 }
 0x459   :  { %v1162_v18 = vperm.slane %v1151_v17, %v1155_v36 }
 0x45b   :  { %v1169_v55 = vsel %vm2052_vm15, %v1162_v18, %v1168_v31 }
 0x45c   :  { %v1154_v47 = vpop.permute.xlu1 %1153 }
 0x45d   :  { %v1163_v22 = vperm.slane %v1154_v47, %v1155_v36 }
 0x45f   :  { %v1170_v25 = vsel %vm2053_vm1, %v1163_v22, %v1169_v55 }
 0x460   :  { %1173 = vst.msk [vmem:[%s2029_s7] sm:$0xff] %vm1172_vm10, %v1170_v25 }
 0x461   :  { %1179 = vsyncpa [#allocation3], 1 }

</bundles_post_ra>
